<compile_context>
chip_gen: v5e
topology: v5e:2x2
jax: 0.10.0
libtpu: 0.0.40
codegen_flags: <defaults>
</compile_context>

<pallas_src>
import jax
import jax.numpy as jnp
from jax.experimental import pallas as pl
from jax.experimental.pallas import tpu as pltpu

INPUT_SIZE = 100
HIDDEN1 = 300
HIDDEN2 = 200
OUTPUT_SIZE = 1

# Linear dims of self.mlp, then the head self.liner.
_MLP_DIMS = [
    (INPUT_SIZE, HIDDEN1),
    (HIDDEN1, HIDDEN2),
    (HIDDEN2, HIDDEN1),
    (HIDDEN1, HIDDEN2),
    (HIDDEN2, HIDDEN1),
    (HIDDEN1, HIDDEN2),
    (HIDDEN2, HIDDEN1),
]
_HEAD_DIM = (HIDDEN1, OUTPUT_SIZE)


def _pad128(n):
    return ((n + 127) // 128) * 128


P_IN = _pad128(INPUT_SIZE)     # 128
P_H1 = _pad128(HIDDEN1)        # 384
P_H2 = _pad128(HIDDEN2)        # 256


# --------------------------------------------------------------------------
# Kernel: the whole triplet forward (stacked batch), fully resident in VMEM.
# refs = (x, w1, b1, ..., w7, b7, w_head, b_head, out)
# --------------------------------------------------------------------------
def _triplet_kernel(*refs):
    x_ref = refs[0]
    out_ref = refs[-1]
    prm = refs[1:-1]

    h = x_ref[...]                                        # (Bp, 128) f32

    # 7x [Linear + ReLU]: bf16 MXU inputs, f32 accumulation, f32 bias/ReLU.
    for layer in range(len(_MLP_DIMS)):
        w = prm[2 * layer][...]                           # (Kp, Np) bf16
        b = prm[2 * layer + 1][...]                       # (1, Np)  f32
        acc = jnp.dot(h.astype(jnp.bfloat16), w,
                      preferred_element_type=jnp.float32)
        h = jnp.maximum(acc + b, 0.0)

    # Head Linear(300->1): VPU multiply + lane reduction instead of a 1-wide
    # MXU matmul, then Sigmoid via exp (EUP) + approx reciprocal (EUP).
    w_head = prm[-2][...]                                 # (1, P_H1) f32
    b_head = prm[-1][...]                                 # (1, 1)    f32
    z = jnp.sum(h * w_head, axis=-1, keepdims=True) + b_head
    out_ref[...] = pl.reciprocal(1.0 + jnp.exp(-z), approx=True).astype(out_ref.dtype)


# --------------------------------------------------------------------------
# Parameter construction (mirrors nn.Linear default init) and padding.
# --------------------------------------------------------------------------
def init_params(key):
    """Unpadded f32 params. Weights (in, out); biases (1, out)."""
    params = []
    dims = _MLP_DIMS + [_HEAD_DIM]
    keys = jax.random.split(key, 2 * len(dims))
    for i, (fan_in, fan_out) in enumerate(dims):
        bound = 1.0 / jnp.sqrt(jnp.float32(fan_in))
        w = jax.random.uniform(keys[2 * i], (fan_in, fan_out),
                               minval=-bound, maxval=bound, dtype=jnp.float32)
        b = jax.random.uniform(keys[2 * i + 1], (1, fan_out),
                               minval=-bound, maxval=bound, dtype=jnp.float32)
        params.append(w)
        params.append(b)
    return params


def prepare_params(params):
    """Zero-pad feature dims to multiples of 128; cast MLP weights to bf16."""
    prepared = []
    for i, (fi, fo) in enumerate(_MLP_DIMS):
        w = params[2 * i]
        b = params[2 * i + 1]
        pfi, pfo = _pad128(fi), _pad128(fo)
        w_p = jnp.pad(w, ((0, pfi - fi), (0, pfo - fo))).astype(jnp.bfloat16)
        b_p = jnp.pad(b, ((0, 0), (0, pfo - fo))).astype(jnp.float32)
        prepared.append(w_p)
        prepared.append(b_p)
    # Head: store weight as a (1, P_H1) f32 row for the VPU multiply+reduce.
    w_head = params[-2]                                   # (300, 1)
    b_head = params[-1]                                   # (1, 1)
    w_head_row = jnp.pad(w_head.T, ((0, 0), (0, P_H1 - HIDDEN1))).astype(jnp.float32)
    prepared.append(w_head_row)
    prepared.append(b_head.astype(jnp.float32))
    return prepared


# --------------------------------------------------------------------------
# Fused forward: one pallas_call for all three branches.
# --------------------------------------------------------------------------
@jax.jit
def triplet_forward(x1, x2, x3, *prepared_params):
    batch = x1.shape[0]
    rows = 3 * batch
    rows_p = ((rows + 7) // 8) * 8                        # sublane-aligned rows

    x = jnp.concatenate([x1, x2, x3], axis=0).astype(jnp.float32)
    x = jnp.pad(x, ((0, rows_p - rows), (0, P_IN - INPUT_SIZE)))

    n_inputs = 1 + len(prepared_params)
    # TODO(synk): for large batches, tile rows_p with a grid over the batch and
    # dimension_semantics=("parallel",) so v7x can shard across its 2 TCs.
    out = pl.pallas_call(
        _triplet_kernel,
        out_shape=jax.ShapeDtypeStruct((rows_p, OUTPUT_SIZE), jnp.float32),
        in_specs=[pl.BlockSpec(memory_space=pltpu.MemorySpace.VMEM)] * n_inputs,
        out_specs=pl.BlockSpec(memory_space=pltpu.MemorySpace.VMEM),
    )(x, *prepared_params)

    out = out[:rows]
    return out[:batch], out[batch:2 * batch], out[2 * batch:3 * batch]


# --------------------------------------------------------------------------
# Pure-JAX reference (mimics the kernel's bf16 weight quantization).
# --------------------------------------------------------------------------
def _reference_forward_one(x, params):
    h = x.astype(jnp.float32)
    for layer in range(len(_MLP_DIMS)):
        w = params[2 * layer].astype(jnp.bfloat16)
        b = params[2 * layer + 1]
        acc = jnp.dot(h.astype(jnp.bfloat16), w,
                      preferred_element_type=jnp.float32)
        h = jnp.maximum(acc + b, 0.0)
    z = jnp.dot(h, params[-2]) + params[-1]
    return jax.nn.sigmoid(z)


if __name__ == "__main__":
    key = jax.random.PRNGKey(0)
    kp, k1, k2, k3 = jax.random.split(key, 4)

    batch = 8  # small batch
    params = init_params(kp)
    prepared = prepare_params(params)

    x1 = jax.random.normal(k1, (batch, INPUT_SIZE), dtype=jnp.float32)
    x2 = jax.random.normal(k2, (batch, INPUT_SIZE), dtype=jnp.float32)
    x3 = jax.random.normal(k3, (batch, INPUT_SIZE), dtype=jnp.float32)

    out1, out2, out3 = triplet_forward(x1, x2, x3, *prepared)
    jax.block_until_ready((out1, out2, out3))

    # sanity check vs pure-JAX reference (bf16 weights; tolerance covers the
    # approx EUP reciprocal in the kernel's sigmoid).
    ref1 = _reference_forward_one(x1, params)
    ref2 = _reference_forward_one(x2, params)
    ref3 = _reference_forward_one(x3, params)
    assert out1.shape == (batch, OUTPUT_SIZE)
    assert out2.shape == (batch, OUTPUT_SIZE)
    assert out3.shape == (batch, OUTPUT_SIZE)
    assert jnp.allclose(out1, ref1, atol=1e-2, rtol=0)
    assert jnp.allclose(out2, ref2, atol=1e-2, rtol=0)
    assert jnp.allclose(out3, ref3, atol=1e-2, rtol=0)

    print("KERNEL_OK")
</pallas_src>

<mosaic_0001>
module attributes {stable_mosaic.version = 11 : i64} {
  func.func @_triplet_kernel(%arg0: memref<24x128xf32, #tpu.memory_space<vmem>>, %arg1: memref<128x384xbf16, #tpu.memory_space<vmem>>, %arg2: memref<1x384xf32, #tpu.memory_space<vmem>>, %arg3: memref<384x256xbf16, #tpu.memory_space<vmem>>, %arg4: memref<1x256xf32, #tpu.memory_space<vmem>>, %arg5: memref<256x384xbf16, #tpu.memory_space<vmem>>, %arg6: memref<1x384xf32, #tpu.memory_space<vmem>>, %arg7: memref<384x256xbf16, #tpu.memory_space<vmem>>, %arg8: memref<1x256xf32, #tpu.memory_space<vmem>>, %arg9: memref<256x384xbf16, #tpu.memory_space<vmem>>, %arg10: memref<1x384xf32, #tpu.memory_space<vmem>>, %arg11: memref<384x256xbf16, #tpu.memory_space<vmem>>, %arg12: memref<1x256xf32, #tpu.memory_space<vmem>>, %arg13: memref<256x384xbf16, #tpu.memory_space<vmem>>, %arg14: memref<1x384xf32, #tpu.memory_space<vmem>>, %arg15: memref<1x384xf32, #tpu.memory_space<vmem>>, %arg16: memref<1x1xf32, #tpu.memory_space<vmem>>, %arg17: memref<24x1xf32, #tpu.memory_space<vmem>>) attributes {dimension_semantics = [], scalar_prefetch = 0 : i64, scratch_operands = 0 : i64, tpu.core_type = #tpu.core_type<tc>} {
    %c0 = arith.constant 0 : index
    %c0_0 = arith.constant 0 : index
    %0 = vector.load %arg0[%c0, %c0_0] : memref<24x128xf32, #tpu.memory_space<vmem>>, vector<24x128xf32>
    %c0_1 = arith.constant 0 : index
    %c0_2 = arith.constant 0 : index
    %1 = vector.load %arg1[%c0_1, %c0_2] : memref<128x384xbf16, #tpu.memory_space<vmem>>, vector<128x384xbf16>
    %c0_3 = arith.constant 0 : index
    %c0_4 = arith.constant 0 : index
    %2 = vector.load %arg2[%c0_3, %c0_4] : memref<1x384xf32, #tpu.memory_space<vmem>>, vector<1x384xf32>
    %3 = arith.truncf %0 : vector<24x128xf32> to vector<24x128xbf16>
    %cst = arith.constant dense<0.000000e+00> : vector<24x384xf32>
    %4 = tpu.matmul %3, %1, %cst {dimension_numbers = #tpu.dot_dimension_numbers<[1], [0], [0], [1], [0, 0, 1, 1], [], []>} : vector<24x128xbf16>, vector<128x384xbf16>, vector<24x384xf32> -> vector<24x384xf32>
    %5 = vector.broadcast %2 : vector<1x384xf32> to vector<24x384xf32>
    %6 = arith.addf %4, %5 : vector<24x384xf32>
    %cst_5 = arith.constant 0.000000e+00 : f32
    %7 = vector.broadcast %cst_5 : f32 to vector<24x384xf32>
    %8 = arith.maximumf %6, %7 : vector<24x384xf32>
    %c0_6 = arith.constant 0 : index
    %c0_7 = arith.constant 0 : index
    %9 = vector.load %arg3[%c0_6, %c0_7] : memref<384x256xbf16, #tpu.memory_space<vmem>>, vector<384x256xbf16>
    %c0_8 = arith.constant 0 : index
    %c0_9 = arith.constant 0 : index
    %10 = vector.load %arg4[%c0_8, %c0_9] : memref<1x256xf32, #tpu.memory_space<vmem>>, vector<1x256xf32>
    %11 = arith.truncf %8 : vector<24x384xf32> to vector<24x384xbf16>
    %cst_10 = arith.constant dense<0.000000e+00> : vector<24x256xf32>
    %12 = tpu.matmul %11, %9, %cst_10 {dimension_numbers = #tpu.dot_dimension_numbers<[1], [0], [0], [1], [0, 0, 1, 1], [], []>} : vector<24x384xbf16>, vector<384x256xbf16>, vector<24x256xf32> -> vector<24x256xf32>
    %13 = vector.broadcast %10 : vector<1x256xf32> to vector<24x256xf32>
    %14 = arith.addf %12, %13 : vector<24x256xf32>
    %cst_11 = arith.constant 0.000000e+00 : f32
    %15 = vector.broadcast %cst_11 : f32 to vector<24x256xf32>
    %16 = arith.maximumf %14, %15 : vector<24x256xf32>
    %c0_12 = arith.constant 0 : index
    %c0_13 = arith.constant 0 : index
    %17 = vector.load %arg5[%c0_12, %c0_13] : memref<256x384xbf16, #tpu.memory_space<vmem>>, vector<256x384xbf16>
    %c0_14 = arith.constant 0 : index
    %c0_15 = arith.constant 0 : index
    %18 = vector.load %arg6[%c0_14, %c0_15] : memref<1x384xf32, #tpu.memory_space<vmem>>, vector<1x384xf32>
    %19 = arith.truncf %16 : vector<24x256xf32> to vector<24x256xbf16>
    %cst_16 = arith.constant dense<0.000000e+00> : vector<24x384xf32>
    %20 = tpu.matmul %19, %17, %cst_16 {dimension_numbers = #tpu.dot_dimension_numbers<[1], [0], [0], [1], [0, 0, 1, 1], [], []>} : vector<24x256xbf16>, vector<256x384xbf16>, vector<24x384xf32> -> vector<24x384xf32>
    %21 = vector.broadcast %18 : vector<1x384xf32> to vector<24x384xf32>
    %22 = arith.addf %20, %21 : vector<24x384xf32>
    %cst_17 = arith.constant 0.000000e+00 : f32
    %23 = vector.broadcast %cst_17 : f32 to vector<24x384xf32>
    %24 = arith.maximumf %22, %23 : vector<24x384xf32>
    %c0_18 = arith.constant 0 : index
    %c0_19 = arith.constant 0 : index
    %25 = vector.load %arg7[%c0_18, %c0_19] : memref<384x256xbf16, #tpu.memory_space<vmem>>, vector<384x256xbf16>
    %c0_20 = arith.constant 0 : index
    %c0_21 = arith.constant 0 : index
    %26 = vector.load %arg8[%c0_20, %c0_21] : memref<1x256xf32, #tpu.memory_space<vmem>>, vector<1x256xf32>
    %27 = arith.truncf %24 : vector<24x384xf32> to vector<24x384xbf16>
    %cst_22 = arith.constant dense<0.000000e+00> : vector<24x256xf32>
    %28 = tpu.matmul %27, %25, %cst_22 {dimension_numbers = #tpu.dot_dimension_numbers<[1], [0], [0], [1], [0, 0, 1, 1], [], []>} : vector<24x384xbf16>, vector<384x256xbf16>, vector<24x256xf32> -> vector<24x256xf32>
    %29 = vector.broadcast %26 : vector<1x256xf32> to vector<24x256xf32>
    %30 = arith.addf %28, %29 : vector<24x256xf32>
    %cst_23 = arith.constant 0.000000e+00 : f32
    %31 = vector.broadcast %cst_23 : f32 to vector<24x256xf32>
    %32 = arith.maximumf %30, %31 : vector<24x256xf32>
    %c0_24 = arith.constant 0 : index
    %c0_25 = arith.constant 0 : index
    %33 = vector.load %arg9[%c0_24, %c0_25] : memref<256x384xbf16, #tpu.memory_space<vmem>>, vector<256x384xbf16>
    %c0_26 = arith.constant 0 : index
    %c0_27 = arith.constant 0 : index
    %34 = vector.load %arg10[%c0_26, %c0_27] : memref<1x384xf32, #tpu.memory_space<vmem>>, vector<1x384xf32>
    %35 = arith.truncf %32 : vector<24x256xf32> to vector<24x256xbf16>
    %cst_28 = arith.constant dense<0.000000e+00> : vector<24x384xf32>
    %36 = tpu.matmul %35, %33, %cst_28 {dimension_numbers = #tpu.dot_dimension_numbers<[1], [0], [0], [1], [0, 0, 1, 1], [], []>} : vector<24x256xbf16>, vector<256x384xbf16>, vector<24x384xf32> -> vector<24x384xf32>
    %37 = vector.broadcast %34 : vector<1x384xf32> to vector<24x384xf32>
    %38 = arith.addf %36, %37 : vector<24x384xf32>
    %cst_29 = arith.constant 0.000000e+00 : f32
    %39 = vector.broadcast %cst_29 : f32 to vector<24x384xf32>
    %40 = arith.maximumf %38, %39 : vector<24x384xf32>
    %c0_30 = arith.constant 0 : index
    %c0_31 = arith.constant 0 : index
    %41 = vector.load %arg11[%c0_30, %c0_31] : memref<384x256xbf16, #tpu.memory_space<vmem>>, vector<384x256xbf16>
    %c0_32 = arith.constant 0 : index
    %c0_33 = arith.constant 0 : index
    %42 = vector.load %arg12[%c0_32, %c0_33] : memref<1x256xf32, #tpu.memory_space<vmem>>, vector<1x256xf32>
    %43 = arith.truncf %40 : vector<24x384xf32> to vector<24x384xbf16>
    %cst_34 = arith.constant dense<0.000000e+00> : vector<24x256xf32>
    %44 = tpu.matmul %43, %41, %cst_34 {dimension_numbers = #tpu.dot_dimension_numbers<[1], [0], [0], [1], [0, 0, 1, 1], [], []>} : vector<24x384xbf16>, vector<384x256xbf16>, vector<24x256xf32> -> vector<24x256xf32>
    %45 = vector.broadcast %42 : vector<1x256xf32> to vector<24x256xf32>
    %46 = arith.addf %44, %45 : vector<24x256xf32>
    %cst_35 = arith.constant 0.000000e+00 : f32
    %47 = vector.broadcast %cst_35 : f32 to vector<24x256xf32>
    %48 = arith.maximumf %46, %47 : vector<24x256xf32>
    %c0_36 = arith.constant 0 : index
    %c0_37 = arith.constant 0 : index
    %49 = vector.load %arg13[%c0_36, %c0_37] : memref<256x384xbf16, #tpu.memory_space<vmem>>, vector<256x384xbf16>
    %c0_38 = arith.constant 0 : index
    %c0_39 = arith.constant 0 : index
    %50 = vector.load %arg14[%c0_38, %c0_39] : memref<1x384xf32, #tpu.memory_space<vmem>>, vector<1x384xf32>
    %51 = arith.truncf %48 : vector<24x256xf32> to vector<24x256xbf16>
    %cst_40 = arith.constant dense<0.000000e+00> : vector<24x384xf32>
    %52 = tpu.matmul %51, %49, %cst_40 {dimension_numbers = #tpu.dot_dimension_numbers<[1], [0], [0], [1], [0, 0, 1, 1], [], []>} : vector<24x256xbf16>, vector<256x384xbf16>, vector<24x384xf32> -> vector<24x384xf32>
    %53 = vector.broadcast %50 : vector<1x384xf32> to vector<24x384xf32>
    %54 = arith.addf %52, %53 : vector<24x384xf32>
    %cst_41 = arith.constant 0.000000e+00 : f32
    %55 = vector.broadcast %cst_41 : f32 to vector<24x384xf32>
    %56 = arith.maximumf %54, %55 : vector<24x384xf32>
    %c0_42 = arith.constant 0 : index
    %c0_43 = arith.constant 0 : index
    %57 = vector.load %arg15[%c0_42, %c0_43] : memref<1x384xf32, #tpu.memory_space<vmem>>, vector<1x384xf32>
    %c0_44 = arith.constant 0 : index
    %c0_45 = arith.constant 0 : index
    %58 = vector.load %arg16[%c0_44, %c0_45] : memref<1x1xf32, #tpu.memory_space<vmem>>, vector<1x1xf32>
    %59 = vector.broadcast %57 : vector<1x384xf32> to vector<24x384xf32>
    %60 = arith.mulf %56, %59 : vector<24x384xf32>
    %cst_46 = arith.constant dense<0.000000e+00> : vector<24xf32>
    %61 = vector.multi_reduction <add>, %60, %cst_46 [1] : vector<24x384xf32> to vector<24xf32>
    %62 = vector.shape_cast %61 : vector<24xf32> to vector<24x1xf32>
    %63 = vector.broadcast %58 : vector<1x1xf32> to vector<24x1xf32>
    %64 = arith.addf %62, %63 : vector<24x1xf32>
    %cst_47 = arith.constant 0.000000e+00 : f32
    %65 = vector.broadcast %cst_47 : f32 to vector<24x1xf32>
    %66 = arith.subf %65, %64 : vector<24x1xf32>
    %67 = math.exp %66 : vector<24x1xf32>
    %cst_48 = arith.constant 1.000000e+00 : f32
    %68 = vector.broadcast %cst_48 : f32 to vector<24x1xf32>
    %69 = arith.addf %68, %67 : vector<24x1xf32>
    %70 = tpu.reciprocal %69 {approx = true} : vector<24x1xf32> -> vector<24x1xf32>
    %c0_49 = arith.constant 0 : index
    %c0_50 = arith.constant 0 : index
    %71 = vector.load %arg17[%c0_49, %c0_50] : memref<24x1xf32, #tpu.memory_space<vmem>>, vector<24x1xf32>
    tpu.vector_store %arg17[%c0_49, %c0_50], %70 {strides = array<i32>} : memref<24x1xf32, #tpu.memory_space<vmem>>, vector<24x1xf32>,
    return
  }
}

</mosaic_0001>

<bundles_post_ra>
// kernel: triplet_forward.1
= control target key start
LH: loop header
LB: loop body
LE: loop exit
PB: predicated region body
PF: predicated region fallthrough
CT: control target
= control target key end

     0   :  { %s5159_s0 = inlined_call_operand.vmem [shape: f32[24,128], index: 0, kind: input, shape index: {}]   ;;  %s5160_s1 = inlined_call_operand.hbm [shape: bf16[128,384], index: 1, kind: input, shape index: {}]   ;;  %s5161_s2 = inlined_call_operand.vmem [shape: f32[1,384], index: 2, kind: input, shape index: {}]   ;;  %s5162_s3 = inlined_call_operand.hbm [shape: bf16[384,256], index: 3, kind: input, shape index: {}]   ;;  %s5163_s4 = inlined_call_operand.vmem [shape: f32[1,256], index: 4, kind: input, shape index: {}]   ;;  %s5164_s5 = inlined_call_operand.hbm [shape: bf16[256,384], index: 5, kind: input, shape index: {}]   ;;  %s5165_s6 = inlined_call_operand.vmem [shape: f32[1,384], index: 6, kind: input, shape index: {}]   ;;  %s5166_s7 = inlined_call_operand.hbm [shape: bf16[384,256], index: 7, kind: input, shape index: {}]   ;;  %s5167_s8 = inlined_call_operand.vmem [shape: f32[1,256], index: 8, kind: input, shape index: {}]   ;;  %s5168_s9 = inlined_call_operand.hbm [shape: bf16[256,384], index: 9, kind: input, shape index: {}]   ;;  %s5169_s10 = inlined_call_operand.vmem [shape: f32[1,384], index: 10, kind: input, shape index: {}]   ;;  %s5170_s11 = inlined_call_operand.hbm [shape: bf16[384,256], index: 11, kind: input, shape index: {}]   ;;  %s5171_s12 = inlined_call_operand.vmem [shape: f32[1,256], index: 12, kind: input, shape index: {}]   ;;  %s5172_s13 = inlined_call_operand.hbm [shape: bf16[256,384], index: 13, kind: input, shape index: {}]   ;;  %s5173_s14 = inlined_call_operand.vmem [shape: f32[1,384], index: 14, kind: input, shape index: {}]   ;;  %s5174_s15 = inlined_call_operand.vmem [shape: f32[1,384], index: 15, kind: input, shape index: {}]   ;;  %s5175_s16 = inlined_call_operand.<no memory space> [shape: f32[1,1], index: 16, kind: input, shape index: {}]   ;;  %s5176_s17 = inlined_call_operand.vmem [shape: f32[24,1], index: 17, kind: output, shape index: {}]  }
   0x1   :  { %5178 = sst [smem:[#allocation18_spill]] %s5159_s0  ;;  %v22_v0 = vstv %s5175_s16 }
   0x2   :  { %5179 = sst [smem:[#allocation19_spill]] %s5160_s1  ;;  %23 = vst [vmem:[#allocation2] sm:$0x1] %v22_v0 }
   0x3   :  { %24 = vsyncpa [#allocation4], 0 }
   0x4   :  { %25 = vsyncpa [#allocation6], 0 }
   0x5   :  { %26 = vsyncpa [#allocation9], 0  ;;  %s49_s28 = sshll.u32 %s5162_s3, 4  ;;  %s50_s28 = int_to_ptr.hbm [resolvable:$true] %s49_s28 }
   0x6   :  { %27 = vsyncpa [#allocation12], 0  ;;  %s4823_s29 = smov [#allocation5]   ;;  %s79_s19 = sshll.u32 %s5166_s7, 4  ;;  %s80_s19 = int_to_ptr.hbm [resolvable:$true] %s79_s19 }
   0x7   :  { %s51_s0 = sshll.u32 %s4823_s29, 4  ;;  %s4824_s1 = smov 128   ;;  %s52_s0 = int_to_ptr.vmem [resolvable:$true] %s51_s0 }
   0x8   :  { %s4825_s20 = smov 8   ;;  %s4826_s16 = smov [#allocation8]  }
   0x9   :  { %57 = dma.hbm_to_vmem [thread:$0]  %s50_s28, 6144, %s52_s0, [#allocation6], %s4824_s1, %s4824_s1, %s4825_s20  }
   0xa   :  { %s81_s21 = sshll.u32 %s4826_s16, 4  ;;  %s109_s24 = sshll.u32 %s5170_s11, 4  ;;  %s82_s21 = int_to_ptr.vmem [resolvable:$true] %s81_s21  ;;  %s110_s24 = int_to_ptr.hbm [resolvable:$true] %s109_s24 }
   0xb   :  { %87 = dma.hbm_to_vmem [thread:$0]  %s80_s19, 6144, %s82_s21, [#allocation9], %s4824_s1, %s4824_s1, %s4825_s20  }
   0xc   :  { %s5180_s26 = sld [smem:[#allocation19_spill]]  ;;  %s4827_s29 = smov [#allocation11]  }
   0xd   :  { %s111_s30 = sshll.u32 %s4827_s29, 4  ;;  %s4828_s7 = smov [#allocation3]   ;;  %s112_s30 = int_to_ptr.vmem [resolvable:$true] %s111_s30 }
   0xe   :  { %117 = dma.hbm_to_vmem [thread:$0]  %s110_s24, 6144, %s112_s30, [#allocation12], %s4824_s1, %s4824_s1, %s4825_s20  }
   0xf   :  { %s36_s28 = sshll.u32 %s4828_s7, 4  ;;  %s4829_s0 = smov 192   ;;  %s37_s28 = int_to_ptr.vmem [resolvable:$true] %s36_s28 }
  0x10   :  { %s4830_s18 = smov 12   ;;  %s64_s22 = sshll.u32 %s5164_s5, 4  ;;  %s65_s22 = int_to_ptr.hbm [resolvable:$true] %s64_s22 }
  0x11   :  { %s4831_s19 = smov [#allocation7]   ;;  %s94_s25 = sshll.u32 %s5168_s9, 4  ;;  %s95_s25 = int_to_ptr.hbm [resolvable:$true] %s94_s25 }
  0x12   :  { %s34_s27 = sshll.u32 %s5180_s26, 4  ;;  %s66_s21 = sshll.u32 %s4831_s19, 4  ;;  %s35_s27 = int_to_ptr.hbm [resolvable:$true] %s34_s27  ;;  %s67_s21 = int_to_ptr.vmem [resolvable:$true] %s66_s21 }
  0x13   :  { %42 = dma.hbm_to_vmem [thread:$0]  %s35_s27, 3072, %s37_s28, [#allocation4], %s4829_s0, %s4829_s0, %s4830_s18  }
  0x14   :  { %72 = dma.hbm_to_vmem [thread:$0]  %s65_s22, 6144, %s67_s21, [#allocation6], %s4829_s0, %s4829_s0, %s4830_s18  }
  0x15   :  { %s4832_s1 = smov [#allocation10]   ;;  %s124_s27 = sshll.u32 %s5172_s13, 4  ;;  %s125_s27 = int_to_ptr.hbm [resolvable:$true] %s124_s27 }
  0x16   :  { %s96_s20 = sshll.u32 %s4832_s1, 4  ;;  %s4833_s5 = smov [#allocation13]   ;;  %s97_s20 = int_to_ptr.vmem [resolvable:$true] %s96_s20 }
  0x17   :  { %102 = dma.hbm_to_vmem [thread:$0]  %s95_s25, 6144, %s97_s20, [#allocation9], %s4829_s0, %s4829_s0, %s4830_s18  }
  0x18   :  { %s126_s29 = sshll.u32 %s4833_s5, 4  ;;  %s127_s29 = int_to_ptr.vmem [resolvable:$true] %s126_s29 }
  0x19   :  { %132 = dma.hbm_to_vmem [thread:$0]  %s125_s27, 6144, %s127_s29, [#allocation12], %s4829_s0, %s4829_s0, %s4830_s18  }
  0x1a   :  { %4815 = dma.done.wait [#allocation4], 3072  }
  0x1b   :  { %4816 = vsyncadd [#allocation4], 4294964224 }
  0x1c   :  { %4817 = dma.done.wait [#allocation6], 12288  }
  0x1d   :  { %4818 = vsyncadd [#allocation6], 4294955008 }
  0x1e   :  { %4819 = dma.done.wait [#allocation9], 12288  }
  0x1f   :  { %4820 = vsyncadd [#allocation9], 4294955008 }
  0x20   :  { %4821 = dma.done.wait [#allocation12], 12288  }
  0x21   :  { %4822 = vsyncadd [#allocation12], 4294955008  ;;  %v3141_v1 = vld [vmem:[#allocation3 + $0xa8] sm:$0xf]  ;;  %v4325_v2 = vld [vmem:[#allocation3 + $0xb0] sm:$0xf0] }
  0x22   :  { %v4324_v3 = vld [vmem:[#allocation3 + $0xac] sm:$0xf]  ;;  %v3142_v4 = vor.u32 %v4325_v2, %v3141_v1  ;;  %v3143_v5 = vld [vmem:[#allocation3 + $0xb4] sm:$0xf0]  ;;  %v3129_v6 = vld [vmem:[#allocation3 + $0x90] sm:$0xf] }
  0x23   :  { %v4322_v7 = vld [vmem:[#allocation3 + $0x98] sm:$0xf0]  ;;  %v3146_v8 = vor.u32 %v4324_v3, %v3143_v5  ;;  %v4321_v9 = vld [vmem:[#allocation3 + $0x94] sm:$0xf]  ;;  %v3131_v10 = vld [vmem:[#allocation3 + $0x9c] sm:$0xf0] }
  0x24   :  { %v3149_v11 = vld [vmem:[#allocation3 + $0xb0] sm:$0xf]  ;;  %340 = vmatpush.bf16.msra.mxu0 %v3142_v4  ;;  %v3130_v12 = vor.u32 %v4322_v7, %v3129_v6  ;;  %v4326_v13 = vld [vmem:[#allocation3 + $0xb8] sm:$0xf0]  ;;  %v3134_v14 = vor.u32 %v4321_v9, %v3131_v10  ;;  %v3117_v16 = vld [vmem:[#allocation3 + $0x78] sm:$0xf] }
  0x25   :  { %358 = vmatpush.bf16.msra.mxu1 %v3146_v8  ;;  %v3150_v15 = vor.u32 %v4326_v13, %v3149_v11  ;;  %v4319_v17 = vld [vmem:[#allocation3 + $0x80] sm:$0xf0]  ;;  %v3137_v18 = vld [vmem:[#allocation3 + $0x98] sm:$0xf]  ;;  %v4318_v19 = vld [vmem:[#allocation3 + $0x7c] sm:$0xf] }
  0x26   :  { %v3119_v20 = vld [vmem:[#allocation3 + $0x84] sm:$0xf0]  ;;  %v4323_v21 = vld [vmem:[#allocation3 + $0xa0] sm:$0xf0]  ;;  %v3118_v23 = vor.u32 %v4319_v17, %v3117_v16  ;;  %v3125_v24 = vld [vmem:[#allocation3 + $0x80] sm:$0xf] }
  0x27   :  { %376 = vmatpush.bf16.msra.mxu2 %v3150_v15  ;;  %v3138_v22 = vor.u32 %v4323_v21, %v3137_v18  ;;  %v4320_v25 = vld [vmem:[#allocation3 + $0x88] sm:$0xf0]  ;;  %v3122_v26 = vor.u32 %v4318_v19, %v3119_v20  ;;  %v3105_v27 = vld [vmem:[#allocation3 + $0x60] sm:$0xf]  ;;  %v4315_v29 = vld [vmem:[#allocation3 + $0x64] sm:$0xf] }
  0x28   :  { %341 = vmatpush.bf16.msra.mxu0 %v3130_v12  ;;  %v4316_v28 = vld [vmem:[#allocation3 + $0x68] sm:$0xf0]  ;;  %v3107_v30 = vld [vmem:[#allocation3 + $0x6c] sm:$0xf0]  ;;  %v3126_v31 = vor.u32 %v4320_v25, %v3125_v24  ;;  %v3113_v33 = vld [vmem:[#allocation3 + $0x68] sm:$0xf] }
  0x29   :  { %359 = vmatpush.bf16.msra.mxu1 %v3134_v14  ;;  %v3106_v32 = vor.u32 %v4316_v28, %v3105_v27  ;;  %v4317_v34 = vld [vmem:[#allocation3 + $0x70] sm:$0xf0]  ;;  %v3110_v35 = vor.u32 %v4315_v29, %v3107_v30  ;;  %v3093_v36 = vld [vmem:[#allocation3 + $0x48] sm:$0xf]  ;;  %v4312_v38 = vld [vmem:[#allocation3 + $0x4c] sm:$0xf] }
  0x2a   :  { %v4313_v37 = vld [vmem:[#allocation3 + $0x50] sm:$0xf0]  ;;  %v3095_v39 = vld [vmem:[#allocation3 + $0x54] sm:$0xf0]  ;;  %v3114_v40 = vor.u32 %v4317_v34, %v3113_v33  ;;  %v3101_v42 = vld [vmem:[#allocation3 + $0x50] sm:$0xf] }
  0x2b   :  { %377 = vmatpush.bf16.msra.mxu2 %v3138_v22  ;;  %v3094_v41 = vor.u32 %v4313_v37, %v3093_v36  ;;  %v4314_v43 = vld [vmem:[#allocation3 + $0x58] sm:$0xf0]  ;;  %v3098_v44 = vor.u32 %v4312_v38, %v3095_v39  ;;  %v3081_v45 = vld [vmem:[#allocation3 + $0x30] sm:$0xf]  ;;  %v4309_v47 = vld [vmem:[#allocation3 + $0x34] sm:$0xf] }
  0x2c   :  { %342 = vmatpush.bf16.msra.mxu0 %v3118_v23  ;;  %v4310_v46 = vld [vmem:[#allocation3 + $0x38] sm:$0xf0]  ;;  %v3083_v48 = vld [vmem:[#allocation3 + $0x3c] sm:$0xf0]  ;;  %v3102_v49 = vor.u32 %v4314_v43, %v3101_v42  ;;  %v3089_v51 = vld [vmem:[#allocation3 + $0x38] sm:$0xf] }
  0x2d   :  { %360 = vmatpush.bf16.msra.mxu1 %v3122_v26  ;;  %v3082_v50 = vor.u32 %v4310_v46, %v3081_v45  ;;  %v4311_v52 = vld [vmem:[#allocation3 + $0x40] sm:$0xf0]  ;;  %v3086_v53 = vor.u32 %v4309_v47, %v3083_v48  ;;  %v3069_v54 = vld [vmem:[#allocation3 + $0x18] sm:$0xf]  ;;  %v4306_v56 = vld [vmem:[#allocation3 + $0x1c] sm:$0xf] }
  0x2e   :  { %v4307_v55 = vld [vmem:[#allocation3 + $0x20] sm:$0xf0]  ;;  %v3071_v57 = vld [vmem:[#allocation3 + $0x24] sm:$0xf0]  ;;  %v3209_v58 = vld [vmem:[#allocation5 + $0x70] sm:$0xf]  ;;  %v3090_v60 = vor.u32 %v4311_v52, %v3089_v51 }
  0x2f   :  { %378 = vmatpush.bf16.msra.mxu2 %v3126_v31  ;;  %v4342_v59 = vld [vmem:[#allocation5 + $0x74] sm:$0xf0]  ;;  %v3057_v61 = vld [vmem:[#allocation3] sm:$0xf]  ;;  %v3070_v0 = vor.u32 %v4307_v55, %v3069_v54  ;;  %v4308_v1 = vld [vmem:[#allocation3 + $0x28] sm:$0xf0]  ;;  %v3074_v4 = vor.u32 %v4306_v56, %v3071_v57 }
  0x30   :  { %343 = vmatpush.bf16.msra.mxu0 %v3106_v32  ;;  %v3077_v62 = vld [vmem:[#allocation3 + $0x20] sm:$0xf]  ;;  %v3210_v63 = vor.u32 %v4342_v59, %v3209_v58  ;;  %v4340_v3 = vld [vmem:[#allocation5 + $0x64] sm:$0xf0]  ;;  %v4304_v5 = vld [vmem:[#allocation3 + $0x8] sm:$0xf0] }
  0x31   :  { %361 = vmatpush.bf16.msra.mxu1 %v3110_v35  ;;  %v3201_v2 = vld [vmem:[#allocation5 + $0x60] sm:$0xf]  ;;  %v4303_v6 = vld [vmem:[#allocation3 + $0x4] sm:$0xf]  ;;  %v3059_v7 = vld [vmem:[#allocation3 + $0xc] sm:$0xf0]  ;;  %v3078_v13 = vor.u32 %v4308_v1, %v3077_v62  ;;  %v3058_v17 = vor.u32 %v4304_v5, %v3057_v61 }
  0x32   :  { %703 = vmatpush.bf16.msra.mxu3 %v3210_v63  ;;  %v3202_v8 = vor.u32 %v4340_v3, %v3201_v2  ;;  %s5181_s30 = sld [smem:[#allocation18_spill]]  ;;  %v3273_v11 = vld [vmem:[#allocation5 + $0xf0] sm:$0xf]  ;;  %v4358_v12 = vld [vmem:[#allocation5 + $0xf4] sm:$0xf0]  ;;  %v3062_v21 = vor.u32 %v4303_v6, %v3059_v7  ;;  %vm3043_vm0 = vcmask 7168  }
  0x33   :  { %379 = vmatpush.bf16.msra.mxu2 %v3114_v40  ;;  %v3065_v14 = vld [vmem:[#allocation3 + $0x8] sm:$0xf]  ;;  %v3193_v15 = vld [vmem:[#allocation5 + $0x50] sm:$0xf]  ;;  %v4338_v16 = vld [vmem:[#allocation5 + $0x54] sm:$0xf0]  ;;  %v3274_v22 = vor.u32 %v4358_v12, %v3273_v11 }
  0x34   :  { %344 = vmatpush.bf16.msra.mxu0 %v3094_v41  ;;  %v4305_v18 = vld [vmem:[#allocation3 + $0x10] sm:$0xf0]  ;;  %v3337_v19 = vld [vmem:[#allocation5 + $0x170] sm:$0xf]  ;;  %v4374_v20 = vld [vmem:[#allocation5 + $0x174] sm:$0xf0]  ;;  %v3194_v27 = vor.u32 %v4338_v16, %v3193_v15 }
  0x35   :  { %362 = vmatpush.bf16.msra.mxu1 %v3098_v44  ;;  %v4341_v23 = vld [vmem:[#allocation5 + $0x74] sm:$0xf]  ;;  %v3211_v24 = vld [vmem:[#allocation5 + $0x78] sm:$0xf0]  ;;  %v3265_v25 = vld [vmem:[#allocation5 + $0xe0] sm:$0xf]  ;;  %v3338_v28 = vor.u32 %v4374_v20, %v3337_v19  ;;  %v3066_v30 = vor.u32 %v4305_v18, %v3065_v14 }
  0x36   :  { %704 = vmatpush.bf16.msra.mxu3 %v3202_v8  ;;  %v4356_v26 = vld [vmem:[#allocation5 + $0xe4] sm:$0xf0]  ;;  %v3185_v31 = vld [vmem:[#allocation5 + $0x40] sm:$0xf]  ;;  %v3214_v33 = vor.u32 %v4341_v23, %v3211_v24  ;;  %v4339_v37 = vld [vmem:[#allocation5 + $0x64] sm:$0xf] }
  0x37   :  { %380 = vmatpush.bf16.msra.mxu2 %v3102_v49  ;;  %v4336_v32 = vld [vmem:[#allocation5 + $0x44] sm:$0xf0]  ;;  %v3329_v34 = vld [vmem:[#allocation5 + $0x160] sm:$0xf]  ;;  %v3266_v36 = vor.u32 %v4356_v26, %v3265_v25  ;;  %v3203_v38 = vld [vmem:[#allocation5 + $0x68] sm:$0xf0] }
  0x38   :  { %345 = vmatpush.bf16.msra.mxu0 %v3082_v50  ;;  %v167_v9 = vld [vmem:[%s5181_s30] sm:$0xff]  ;;  %v168_v10 = vld [vmem:[%s5181_s30 + $0x8] sm:$0xff]  ;;  %v3257_v39 = vld [vmem:[#allocation5 + $0xd0] sm:$0xf]  ;;  %v3186_v41 = vor.u32 %v4336_v32, %v3185_v31  ;;  %v3206_v43 = vor.u32 %v4339_v37, %v3203_v38 }
  0x39   :  { %363 = vmatpush.bf16.msra.mxu1 %v3086_v53  ;;  %v203_v29 = vpack.c.bf16 %v168_v10, %v167_v9  ;;  %v4372_v35 = vld [vmem:[#allocation5 + $0x164] sm:$0xf0]  ;;  %v4354_v40 = vld [vmem:[#allocation5 + $0xd4] sm:$0xf0]  ;;  %v4337_v45 = vld [vmem:[#allocation5 + $0x54] sm:$0xf] }
  0x3a   :  { %705 = vmatpush.bf16.msra.mxu3 %v3194_v27  ;;  %v3330_v42 = vor.u32 %v4372_v35, %v3329_v34  ;;  %v3258_v44 = vor.u32 %v4354_v40, %v3257_v39  ;;  %v3195_v46 = vld [vmem:[#allocation5 + $0x58] sm:$0xf0]  ;;  %v3249_v47 = vld [vmem:[#allocation5 + $0xc0] sm:$0xf]  ;;  %v4352_v48 = vld [vmem:[#allocation5 + $0xc4] sm:$0xf0] }
  0x3b   :  { %381 = vmatpush.bf16.msra.mxu2 %v3090_v60  ;;  %v3198_v49 = vor.u32 %v4337_v45, %v3195_v46  ;;  %v3250_v50 = vor.u32 %v4352_v48, %v3249_v47  ;;  %v4335_v51 = vld [vmem:[#allocation5 + $0x44] sm:$0xf]  ;;  %v3187_v52 = vld [vmem:[#allocation5 + $0x48] sm:$0xf0]  ;;  %v3177_v56 = vld [vmem:[#allocation5 + $0x30] sm:$0xf] }
  0x3c   :  { %346 = vmatpush.bf16.msra.mxu0 %v3070_v0  ;;  %v169_v53 = vld [vmem:[%s5181_s30 + $0x10] sm:$0xff]  ;;  %v3190_v54 = vor.u32 %v4335_v51, %v3187_v52  ;;  %v4334_v57 = vld [vmem:[#allocation5 + $0x34] sm:$0xf0]  ;;  %v3179_v62 = vld [vmem:[#allocation5 + $0x38] sm:$0xf0] }
  0x3d   :  { %364 = vmatpush.bf16.msra.mxu1 %v3074_v4  ;;  %v204_v55 = vpack.c.bf16 %v169_v53, %v169_v53  ;;  %v3241_v58 = vld [vmem:[#allocation5 + $0xb0] sm:$0xf]  ;;  %v3178_v59 = vor.u32 %v4334_v57, %v3177_v56  ;;  %v4350_v60 = vld [vmem:[#allocation5 + $0xb4] sm:$0xf0]  ;;  %v4333_v61 = vld [vmem:[#allocation5 + $0x34] sm:$0xf] }
  0x3e   :  { %706 = vmatpush.bf16.msra.mxu3 %v3186_v41  ;;  %v3242_v63 = vor.u32 %v4350_v60, %v3241_v58  ;;  %v3182_v0 = vor.u32 %v4333_v61, %v3179_v62  ;;  %v3321_v1 = vld [vmem:[#allocation5 + $0x150] sm:$0xf]  ;;  %v4370_v2 = vld [vmem:[#allocation5 + $0x154] sm:$0xf0]  ;;  %v3169_v4 = vld [vmem:[#allocation5 + $0x20] sm:$0xf] }
  0x3f   :  { %382 = vmatpush.bf16.msra.mxu2 %v3078_v13  ;;  %v3322_v3 = vor.u32 %v4370_v2, %v3321_v1  ;;  %v4332_v5 = vld [vmem:[#allocation5 + $0x24] sm:$0xf0]  ;;  %v3233_v6 = vld [vmem:[#allocation5 + $0xa0] sm:$0xf]  ;;  %v4331_v9 = vld [vmem:[#allocation5 + $0x24] sm:$0xf] }
  0x40   :  { %347 = vmatpush.bf16.msra.mxu0 %v3058_v17  ;;  %v3170_v7 = vor.u32 %v4332_v5, %v3169_v4  ;;  %v4348_v8 = vld [vmem:[#allocation5 + $0xa4] sm:$0xf0]  ;;  %v3171_v11 = vld [vmem:[#allocation5 + $0x28] sm:$0xf0]  ;;  %v3313_v12 = vld [vmem:[#allocation5 + $0x140] sm:$0xf] }
  0x41   :  { %365 = vmatpush.bf16.msra.mxu1 %v3062_v21  ;;  %v3234_v10 = vor.u32 %v4348_v8, %v3233_v6  ;;  %v4368_v13 = vld [vmem:[#allocation5 + $0x144] sm:$0xf0]  ;;  %v3174_v14 = vor.u32 %v4331_v9, %v3171_v11  ;;  %v3161_v16 = vld [vmem:[#allocation5 + $0x10] sm:$0xf]  ;;  %v4330_v17 = vld [vmem:[#allocation5 + $0x14] sm:$0xf0] }
  0x42   :  { %707 = vmatpush.bf16.msra.mxu3 %v3178_v59  ;;  %v3314_v15 = vor.u32 %v4368_v13, %v3313_v12  ;;  %v3225_v18 = vld [vmem:[#allocation5 + $0x90] sm:$0xf]  ;;  %v3162_v19 = vor.u32 %v4330_v17, %v3161_v16  ;;  %v4346_v20 = vld [vmem:[#allocation5 + $0x94] sm:$0xf0]  ;;  %v4329_v21 = vld [vmem:[#allocation5 + $0x14] sm:$0xf] }
  0x43   :  { %348 = vmatmul.bf16.vlgmr.msra.gmra.mxu0 %v203_v29  ;;  %383 = vmatpush.bf16.msra.mxu2 %v3066_v30  ;;  %v3226_v23 = vor.u32 %v4346_v20, %v3225_v18  ;;  %v3305_v25 = vld [vmem:[#allocation5 + $0x130] sm:$0xf]  ;;  %v4366_v26 = vld [vmem:[#allocation5 + $0x134] sm:$0xf0]  ;;  %v3217_v30 = vld [vmem:[#allocation5 + $0x80] sm:$0xf] }
  0x44   :  { %721 = vmatpush.bf16.msrb.mxu0 %v3274_v22  ;;  %366 = vmatmul.bf16.vlgmr.msra.gmra.mxu1 %v203_v29  ;;  %v3163_v22 = vld [vmem:[#allocation5 + $0x18] sm:$0xf0]  ;;  %v3306_v27 = vor.u32 %v4366_v26, %v3305_v25  ;;  %v4344_v32 = vld [vmem:[#allocation5 + $0x84] sm:$0xf0]  ;;  %v3155_v34 = vld [vmem:[#allocation5 + $0x8] sm:$0xf0] }
  0x45   :  { %739 = vmatpush.bf16.msrb.mxu1 %v3338_v28  ;;  %v3166_v24 = vor.u32 %v4329_v21, %v3163_v22  ;;  %v3153_v28 = vld [vmem:[#allocation5] sm:$0xf]  ;;  %v3218_v35 = vor.u32 %v4344_v32, %v3217_v30  ;;  %v4364_v38 = vld [vmem:[#allocation5 + $0x124] sm:$0xf0]  ;;  %v4357_v40 = vld [vmem:[#allocation5 + $0xf4] sm:$0xf] }
  0x46   :  { %384 = vmatmul.bf16.vlgmr.msra.gmra.mxu2 %v203_v29  ;;  %708 = vmatpush.bf16.msra.mxu3 %v3170_v7  ;;  %v4328_v29 = vld [vmem:[#allocation5 + $0x4] sm:$0xf0]  ;;  %v3297_v37 = vld [vmem:[#allocation5 + $0x120] sm:$0xf]  ;;  %v3275_v41 = vld [vmem:[#allocation5 + $0xf8] sm:$0xf0] }
  0x47   :  { %757 = vmatpush.bf16.msrb.mxu2 %v3214_v33  ;;  %v3154_v31 = vor.u32 %v4328_v29, %v3153_v28  ;;  %v4327_v33 = vld [vmem:[#allocation5 + $0x4] sm:$0xf]  ;;  %v3298_v39 = vor.u32 %v4364_v38, %v3297_v37  ;;  %v3289_v46 = vld [vmem:[#allocation5 + $0x110] sm:$0xf]  ;;  %v4362_v47 = vld [vmem:[#allocation5 + $0x114] sm:$0xf0] }
  0x48   :  { %722 = vmatpush.bf16.msrb.mxu0 %v3266_v36  ;;  %v3158_v36 = vor.u32 %v4327_v33, %v3155_v34  ;;  %v3290_v48 = vor.u32 %v4362_v47, %v3289_v46  ;;  %v4371_v51 = vld [vmem:[#allocation5 + $0x164] sm:$0xf]  ;;  %v3331_v53 = vld [vmem:[#allocation5 + $0x168] sm:$0xf0]  ;;  %v4360_v56 = vld [vmem:[#allocation5 + $0x104] sm:$0xf0] }
  0x49   :  { %740 = vmatpush.bf16.msrb.mxu1 %v3330_v42  ;;  %v4373_v42 = vld [vmem:[#allocation5 + $0x174] sm:$0xf]  ;;  %v3259_v59 = vld [vmem:[#allocation5 + $0xd8] sm:$0xf0]  ;;  %v3251_v1 = vld [vmem:[#allocation5 + $0xc8] sm:$0xf0] }
  0x4a   :  { %709 = vmatpush.bf16.msra.mxu3 %v3162_v19  ;;  %v4353_v57 = vld [vmem:[#allocation5 + $0xd4] sm:$0xf]  ;;  %v3323_v62 = vld [vmem:[#allocation5 + $0x158] sm:$0xf0]  ;;  %v4367_v2 = vld [vmem:[#allocation5 + $0x144] sm:$0xf] }
  0x4b   :  { %758 = vmatpush.bf16.msrb.mxu2 %v3206_v43  ;;  %v3278_v43 = vor.u32 %v4357_v40, %v3275_v41  ;;  %v3262_v60 = vor.u32 %v4353_v57, %v3259_v59  ;;  %v4369_v61 = vld [vmem:[#allocation5 + $0x154] sm:$0xf]  ;;  %v3315_v4 = vld [vmem:[#allocation5 + $0x148] sm:$0xf0]  ;;  %v3243_v7 = vld [vmem:[#allocation5 + $0xb8] sm:$0xf0] }
  0x4c   :  { %723 = vmatpush.bf16.msrb.mxu0 %v3258_v44  ;;  %v3339_v44 = vld [vmem:[#allocation5 + $0x178] sm:$0xf0]  ;;  %v3318_v5 = vor.u32 %v4367_v2, %v3315_v4  ;;  %v4349_v6 = vld [vmem:[#allocation5 + $0xb4] sm:$0xf]  ;;  %v4363_v16 = vld [vmem:[#allocation5 + $0x124] sm:$0xf] }
  0x4d   :  { %741 = vmatpush.bf16.msrb.mxu1 %v3322_v3  ;;  %v3342_v45 = vor.u32 %v4373_v42, %v3339_v44  ;;  %v4365_v8 = vld [vmem:[#allocation5 + $0x134] sm:$0xf]  ;;  %v202_v9 = vld [vmem:[%s5161_s2] sm:$0x7]  ;;  %v3299_v19 = vld [vmem:[#allocation5 + $0x128] sm:$0xf0] }
  0x4e   :  { %710 = vmatpush.bf16.msra.mxu3 %v3154_v31  ;;  %v3307_v11 = vld [vmem:[#allocation5 + $0x138] sm:$0xf0]  ;;  %v207_v20 = vperm.slane %v202_v9, 1  ;;  %v3302_v21 = vor.u32 %v4363_v16, %v3299_v19  ;;  %v4345_v22 = vld [vmem:[#allocation5 + $0x94] sm:$0xf]  ;;  %v208_v42 = vperm.slane %v202_v9, 2 }
  0x4f   :  { %759 = vmatpush.bf16.msrb.mxu2 %v3198_v49  ;;  %v4355_v49 = vld [vmem:[#allocation5 + $0xe4] sm:$0xf]  ;;  %v3310_v13 = vor.u32 %v4365_v8, %v3307_v11  ;;  %v4361_v25 = vld [vmem:[#allocation5 + $0x114] sm:$0xf]  ;;  %v3291_v26 = vld [vmem:[#allocation5 + $0x118] sm:$0xf0] }
  0x50   :  { %724 = vmatpush.bf16.msrb.mxu0 %v3250_v50  ;;  %v3267_v50 = vld [vmem:[#allocation5 + $0xe8] sm:$0xf0]  ;;  %v3294_v29 = vor.u32 %v4361_v25, %v3291_v26  ;;  %v4343_v32 = vld [vmem:[#allocation5 + $0x84] sm:$0xf]  ;;  %v3429_v4 = vld [vmem:[#allocation7 + $0xa8] sm:$0xf] }
  0x51   :  { %742 = vmatpush.bf16.msrb.mxu1 %v3314_v15  ;;  %v3270_v52 = vor.u32 %v4355_v49, %v3267_v50  ;;  %v3235_v15 = vld [vmem:[#allocation5 + $0xa8] sm:$0xf0]  ;;  %v4359_v34 = vld [vmem:[#allocation5 + $0x104] sm:$0xf]  ;;  %v4394_v11 = vld [vmem:[#allocation7 + $0x98] sm:$0xf0] }
  0x52   :  { %775 = vmatpush.bf16.msrb.mxu3 %v3278_v43  ;;  %v3219_v33 = vld [vmem:[#allocation5 + $0x88] sm:$0xf0]  ;;  %v4391_v19 = vld [vmem:[#allocation7 + $0x80] sm:$0xf0] }
  0x53   :  { %760 = vmatpush.bf16.msrb.mxu2 %v3190_v54  ;;  %353 = vmatmul.bf16.gmra.mxu0 %v204_v55  ;;  %v3334_v54 = vor.u32 %v4371_v51, %v3331_v53  ;;  %v3222_v38 = vor.u32 %v4343_v32, %v3219_v33  ;;  %v4388_v25 = vld [vmem:[#allocation7 + $0x68] sm:$0xf0]  ;;  %v4387_v26 = vld [vmem:[#allocation7 + $0x64] sm:$0xf] }
  0x54   :  { %371 = vmatmul.bf16.gmra.mxu1 %v204_v55  ;;  %725 = vmatpush.bf16.msrb.mxu0 %v3242_v63  ;;  %v3326_v63 = vor.u32 %v4369_v61, %v3323_v62  ;;  %v4384_v32 = vld [vmem:[#allocation7 + $0x4c] sm:$0xf] }
  0x55   :  { %743 = vmatpush.bf16.msrb.mxu1 %v3306_v27 }
  0x56   :  { %389 = vmatmul.bf16.gmra.mxu2 %v204_v55  ;;  %v3281_v55 = vld [vmem:[#allocation5 + $0x100] sm:$0xf]  ;;  %776 = vmatpush.bf16.msrb.mxu3 %v3270_v52 }
  0x57   :  { %761 = vmatpush.bf16.msrb.mxu2 %v3182_v0  ;;  %v3282_v58 = vor.u32 %v4360_v56, %v3281_v55  ;;  %v4351_v0 = vld [vmem:[#allocation5 + $0xc4] sm:$0xf] }
  0x58   :  { %726 = vmatpush.bf16.msrb.mxu0 %v3234_v10  ;;  %v3254_v3 = vor.u32 %v4351_v0, %v3251_v1  ;;  %v3246_v10 = vor.u32 %v4349_v6, %v3243_v7  ;;  %v4396_v6 = vld [vmem:[#allocation7 + $0xac] sm:$0xf] }
  0x59   :  { %744 = vmatpush.bf16.msrb.mxu1 %v3298_v39  ;;  %v3283_v39 = vld [vmem:[#allocation5 + $0x108] sm:$0xf0] }
  0x5a   :  { %777 = vmatpush.bf16.msrb.mxu3 %v3262_v60  ;;  %v3286_v43 = vor.u32 %v4359_v34, %v3283_v39  ;;  %v3383_v34 = vld [vmem:[#allocation7 + $0x54] sm:$0xf0] }
  0x5b   :  { %762 = vmatpush.bf16.msrb.mxu2 %v3174_v14  ;;  %v4347_v14 = vld [vmem:[#allocation5 + $0xa4] sm:$0xf] }
  0x5c   :  { %727 = vmatpush.bf16.msrb.mxu0 %v3226_v23  ;;  %v3238_v18 = vor.u32 %v4347_v14, %v3235_v15  ;;  %v3227_v23 = vld [vmem:[#allocation5 + $0x98] sm:$0xf0]  ;;  %v3419_v14 = vld [vmem:[#allocation7 + $0x9c] sm:$0xf0] }
  0x5d   :  { %745 = vmatpush.bf16.msrb.mxu1 %v3290_v48  ;;  %v3230_v27 = vor.u32 %v4345_v22, %v3227_v23  ;;  %v3407_v22 = vld [vmem:[#allocation7 + $0x84] sm:$0xf0] }
  0x5e   :  { %778 = vmatpush.bf16.msrb.mxu3 %v3254_v3 }
  0x5f   :  { %763 = vmatpush.bf16.msrb.mxu2 %v3166_v24  ;;  %v206_v24 = vperm.slane %v202_v9, 0  ;;  %v3431_v9 = vld [vmem:[#allocation7 + $0xb4] sm:$0xf0] }
  0x60   :  { %728 = vmatpush.bf16.msrb.mxu0 %v3218_v35 }
  0x61   :  { %746 = vmatpush.bf16.msrb.mxu1 %v3282_v58 }
  0x62   :  { %779 = vmatpush.bf16.msrb.mxu3 %v3246_v10  ;;  %v3417_v10 = vld [vmem:[#allocation7 + $0x90] sm:$0xf] }
  0x63   :  { %764 = vmatpush.bf16.msrb.mxu2 %v3158_v36  ;;  %v3418_v15 = vor.u32 %v4394_v11, %v3417_v10  ;;  %v4414_v10 = vld [vmem:[#allocation7 + $0x13c] sm:$0xf] }
  0x64   :  { %793 = vmatpush.bf16.msra.mxu0 %v3342_v45 }
  0x66   :  { %780 = vmatpush.bf16.msrb.mxu3 %v3238_v18  ;;  %v3405_v18 = vld [vmem:[#allocation7 + $0x78] sm:$0xf] }
  0x68   :  { %794 = vmatpush.bf16.msra.mxu0 %v3334_v54 }
  0x6a   :  { %781 = vmatpush.bf16.msrb.mxu3 %v3230_v27 }
  0x6c   :  { %795 = vmatpush.bf16.msra.mxu0 %v3326_v63 }
  0x6e   :  { %782 = vmatpush.bf16.msrb.mxu3 %v3222_v38  ;;  %v4381_v38 = vld [vmem:[#allocation7 + $0x34] sm:$0xf] }
  0x70   :  { %796 = vmatpush.bf16.msra.mxu0 %v3318_v5  ;;  %v4397_v5 = vld [vmem:[#allocation7 + $0xb0] sm:$0xf0] }
  0x71   :  { %v3430_v8 = vor.u32 %v4397_v5, %v3429_v4  ;;  %v3425_v5 = vld [vmem:[#allocation7 + $0x98] sm:$0xf] }
  0x73   :  { %1149 = vmatpush.bf16.msra.mxu1 %v3430_v8  ;;  %v3501_v8 = vld [vmem:[#allocation7 + $0x138] sm:$0xf] }
  0x74   :  { %797 = vmatpush.bf16.msra.mxu0 %v3310_v13  ;;  %v4393_v13 = vld [vmem:[#allocation7 + $0x94] sm:$0xf] }
  0x77   :  { %1150 = vmatpush.bf16.msra.mxu1 %v3418_v15  ;;  %v4392_v15 = vld [vmem:[#allocation7 + $0x88] sm:$0xf0] }
  0x78   :  { %798 = vmatpush.bf16.msra.mxu0 %v3302_v21  ;;  %v3406_v21 = vor.u32 %v4391_v19, %v3405_v18  ;;  %v3489_v18 = vld [vmem:[#allocation7 + $0x120] sm:$0xf]  ;;  %v4412_v19 = vld [vmem:[#allocation7 + $0x128] sm:$0xf0] }
  0x7b   :  { %1151 = vmatpush.bf16.msra.mxu1 %v3406_v21  ;;  %v4963_v21 = vld [vmem:[%s5163_s4] sm:$0x3] }
  0x7c   :  { %799 = vmatpush.bf16.msra.mxu0 %v3294_v29 }
  0x80   :  { %800 = vmatpush.bf16.msra.mxu0 %v3286_v43  ;;  %v4379_v43 = vld [vmem:[#allocation7 + $0x20] sm:$0xf0] }
  0xc0   :  { %v349_v12 = vpop.f32.mrf.mxu0 }
  0xc1   :  { %v367_v17 = vpop.f32.mrf.mxu1  ;;  %v350_v30 = vadd.f32 %v349_v12, %v206_v24  ;;  %v3434_v12 = vor.u32 %v4396_v6, %v3431_v9  ;;  %v4395_v6 = vld [vmem:[#allocation7 + $0xa0] sm:$0xf0] }
  0xc2   :  { %v368_v28 = vadd.f32 %v367_v17, %v207_v20  ;;  %v3422_v17 = vor.u32 %v4393_v13, %v3419_v14  ;;  %v4415_v9 = vld [vmem:[#allocation7 + $0x140] sm:$0xf0]  ;;  %v3413_v14 = vld [vmem:[#allocation7 + $0x80] sm:$0xf] }
  0xc3   :  { %v394_v44 = vmax.f32 %v350_v30, 0.0  ;;  %v3381_v30 = vld [vmem:[#allocation7 + $0x48] sm:$0xf]  ;;  %v3502_v11 = vor.u32 %v4415_v9, %v3501_v8 }
  0xc4   :  { %v395_v40 = vmax.f32 %v368_v28, 0.0  ;;  %v3395_v28 = vld [vmem:[#allocation7 + $0x6c] sm:$0xf0] }
  0xc5   :  { %v3398_v29 = vor.u32 %v4387_v26, %v3395_v28  ;;  %v4389_v26 = vld [vmem:[#allocation7 + $0x70] sm:$0xf0] }
  0xc8   :  { %v351_v31 = vpop.f32.mrf.mxu0 }
  0xc9   :  { %v352_v35 = vadd.f32 %v351_v31, %v206_v24  ;;  %v369_v36 = vpop.f32.mrf.mxu1  ;;  %v385_v37 = vpop.f32.mrf.mxu2  ;;  %v4385_v31 = vld [vmem:[#allocation7 + $0x50] sm:$0xf0] }
  0xca   :  { %v370_v41 = vadd.f32 %v369_v36, %v207_v20  ;;  %v386_v48 = vadd.f32 %v385_v37, %v208_v42  ;;  %v3382_v33 = vor.u32 %v4385_v31, %v3381_v30  ;;  %v3369_v36 = vld [vmem:[#allocation7 + $0x30] sm:$0xf]  ;;  %v4382_v37 = vld [vmem:[#allocation7 + $0x38] sm:$0xf0]  ;;  %v3477_v31 = vld [vmem:[#allocation7 + $0x108] sm:$0xf] }
  0xcb   :  { %v397_v45 = vmax.f32 %v352_v35, 0.0  ;;  %v3386_v35 = vor.u32 %v4384_v32, %v3383_v34  ;;  %v3370_v39 = vor.u32 %v4382_v37, %v3369_v36  ;;  %v4409_v32 = vld [vmem:[#allocation7 + $0x110] sm:$0xf0]  ;;  %v3389_v37 = vld [vmem:[#allocation7 + $0x50] sm:$0xf] }
  0xcc   :  { %v398_v46 = vmax.f32 %v370_v41, 0.0  ;;  %v396_v53 = vmax.f32 %v386_v48, 0.0  ;;  %v3345_v48 = vld [vmem:[#allocation7] sm:$0xf]  ;;  %v3478_v34 = vor.u32 %v4409_v32, %v3477_v31 }
  0xcd   :  { %v452_v47 = vpack.c.bf16 %v397_v45, %v394_v44  ;;  %v4378_v44 = vld [vmem:[#allocation7 + $0x1c] sm:$0xf] }
  0xce   :  { %v453_v49 = vpack.c.bf16 %v398_v46, %v395_v40  ;;  %v3371_v40 = vld [vmem:[#allocation7 + $0x3c] sm:$0xf0]  ;;  %v3359_v46 = vld [vmem:[#allocation7 + $0x24] sm:$0xf0] }
  0xcf   :  { %711 = vmatmul.bf16.vlgmr.msra.gmra.mxu3 %v452_v47  ;;  %765 = vmatmul.bf16.vlgmr.msrb.gmra.mxu2 %v452_v47  ;;  %v3374_v41 = vor.u32 %v4381_v38, %v3371_v40  ;;  %v3362_v47 = vor.u32 %v4378_v44, %v3359_v46  ;;  %v4386_v38 = vld [vmem:[#allocation7 + $0x58] sm:$0xf0] }
  0xd0   :  { %729 = vmatmul.bf16.vlgmr.msrb.gmra.mxu0 %v453_v49  ;;  %v354_v50 = vpop.f32.mrf.mxu0  ;;  %1185 = vmatpush.bf16.msra.mxu3 %v3434_v12  ;;  %v3503_v12 = vld [vmem:[#allocation7 + $0x144] sm:$0xf0]  ;;  %v4406_v44 = vld [vmem:[#allocation7 + $0xf8] sm:$0xf0] }
  0xd1   :  { %v387_v51 = vpop.f32.mrf.mxu2  ;;  %v372_v52 = vpop.f32.mrf.mxu1  ;;  %v355_v55 = vadd.f32 %v354_v50, %v206_v24  ;;  %v3393_v24 = vld [vmem:[#allocation7 + $0x60] sm:$0xf]  ;;  %v4375_v50 = vld [vmem:[#allocation7 + $0x4] sm:$0xf]  ;;  %v3506_v13 = vor.u32 %v4414_v10, %v3503_v12  ;;  %v3443_v10 = vld [vmem:[#allocation7 + $0xcc] sm:$0xf0] }
  0xd2   :  { %v388_v54 = vadd.f32 %v387_v51, %v208_v42  ;;  %v373_v57 = vadd.f32 %v372_v52, %v207_v20  ;;  %v4390_v20 = vld [vmem:[#allocation7 + $0x7c] sm:$0xf]  ;;  %v3394_v27 = vor.u32 %v4388_v25, %v3393_v24  ;;  %v3347_v52 = vld [vmem:[#allocation7 + $0xc] sm:$0xf0]  ;;  %v3401_v25 = vld [vmem:[#allocation7 + $0x68] sm:$0xf] }
  0xd3   :  { %v400_v59 = vmax.f32 %v355_v55, 0.0  ;;  %v3410_v23 = vor.u32 %v4390_v20, %v3407_v22  ;;  %v4421_v55 = vld [vmem:[#allocation7 + $0x170] sm:$0xf0]  ;;  %v4411_v20 = vld [vmem:[#allocation7 + $0x124] sm:$0xf]  ;;  %v3490_v22 = vor.u32 %v4412_v19, %v3489_v18  ;;  %v3402_v28 = vor.u32 %v4389_v26, %v3401_v25 }
  0xd4   :  { %v399_v56 = vmax.f32 %v388_v54, 0.0  ;;  %v401_v61 = vmax.f32 %v373_v57, 0.0  ;;  %1186 = vmatpush.bf16.msra.mxu3 %v3422_v17  ;;  %1152 = vmatpush.bf16.msra.mxu1 %v3394_v27  ;;  %v3525_v54 = vld [vmem:[#allocation7 + $0x168] sm:$0xf]  ;;  %v3414_v17 = vor.u32 %v4392_v15, %v3413_v14  ;;  %v4966_v27 = vperm.slane %v4963_v21, 0 }
  0xd5   :  { %v455_v0 = vpack.c.bf16 %v400_v59, %v400_v59  ;;  %v3526_v57 = vor.u32 %v4421_v55, %v3525_v54  ;;  %v3453_v55 = vld [vmem:[#allocation7 + $0xd8] sm:$0xf]  ;;  %v3353_v12 = vld [vmem:[#allocation7 + $0x8] sm:$0xf]  ;;  %v3533_v19 = vld [vmem:[#allocation7 + $0x170] sm:$0xf] }
  0xd6   :  { %v454_v58 = vpack.c.bf16 %v399_v56, %v396_v53  ;;  %v456_v2 = vpack.c.bf16 %v401_v61, %v401_v61  ;;  %v3350_v53 = vor.u32 %v4375_v50, %v3347_v52  ;;  %v4420_v56 = vld [vmem:[#allocation7 + $0x16c] sm:$0xf]  ;;  %v4398_v61 = vld [vmem:[#allocation7 + $0xb8] sm:$0xf0]  ;;  %v4383_v50 = vld [vmem:[#allocation7 + $0x40] sm:$0xf0] }
  0xd7   :  { %1167 = vmatpush.bf16.msra.mxu2 %v3526_v57  ;;  %v4402_v57 = vld [vmem:[#allocation7 + $0xdc] sm:$0xf] }
  0xd8   :  { %v356_v60 = vpop.f32.mrf.mxu0  ;;  %747 = vmatmul.bf16.vlgmr.msrb.gmra.mxu1 %v454_v58  ;;  %1187 = vmatpush.bf16.msra.mxu3 %v3410_v23  ;;  %v3491_v23 = vld [vmem:[#allocation7 + $0x12c] sm:$0xf0] }
  0xd9   :  { %v374_v62 = vpop.f32.mrf.mxu1  ;;  %v390_v63 = vpop.f32.mrf.mxu2  ;;  %1153 = vmatpush.bf16.msra.mxu1 %v3382_v33  ;;  %v3437_v60 = vld [vmem:[#allocation7 + $0xb0] sm:$0xf]  ;;  %v3494_v24 = vor.u32 %v4411_v20, %v3491_v23  ;;  %v4408_v33 = vld [vmem:[#allocation7 + $0x10c] sm:$0xf]  ;;  %v4422_v20 = vld [vmem:[#allocation7 + $0x178] sm:$0xf0] }
  0xda   :  { %v391_v1 = vadd.f32 %v390_v63, %v208_v42  ;;  %v3357_v42 = vld [vmem:[#allocation7 + $0x18] sm:$0xf]  ;;  %v3438_v62 = vor.u32 %v4398_v61, %v3437_v60  ;;  %v3513_v63 = vld [vmem:[#allocation7 + $0x150] sm:$0xf]  ;;  %v3455_v60 = vld [vmem:[#allocation7 + $0xe4] sm:$0xf0] }
  0xdb   :  { %v3358_v45 = vor.u32 %v4379_v43, %v3357_v42  ;;  %v3390_v42 = vor.u32 %v4386_v38, %v3389_v37  ;;  %v3465_v43 = vld [vmem:[#allocation7 + $0xf0] sm:$0xf]  ;;  %v3458_v61 = vor.u32 %v4402_v57, %v3455_v60  ;;  %v3497_v38 = vld [vmem:[#allocation7 + $0x128] sm:$0xf]  ;;  %v3461_v57 = vld [vmem:[#allocation7 + $0xe0] sm:$0xf] }
  0xdc   :  { %v402_v3 = vmax.f32 %v391_v1, 0.0  ;;  %1188 = vmatpush.bf16.msra.mxu3 %v3398_v29  ;;  %v4417_v1 = vld [vmem:[#allocation7 + $0x154] sm:$0xf]  ;;  %v3466_v46 = vor.u32 %v4406_v44, %v3465_v43  ;;  %v460_v44 = vperm.slane %v4963_v21, 1 }
  0xdd   :  { %1154 = vmatpush.bf16.msra.mxu1 %v3370_v39 }
  0xde   :  { %v457_v16 = vpack.c.bf16 %v402_v3, %v402_v3  ;;  %v3515_v3 = vld [vmem:[#allocation7 + $0x15c] sm:$0xf0] }
  0xdf   :  { %716 = vmatmul.bf16.gmra.mxu3 %v455_v0  ;;  %770 = vmatmul.bf16.gmra.mxu2 %v455_v0  ;;  %v4418_v0 = vld [vmem:[#allocation7 + $0x158] sm:$0xf0]  ;;  %v3518_v4 = vor.u32 %v4417_v1, %v3515_v3 }
  0xe0   :  { %734 = vmatmul.bf16.gmra.mxu0 %v456_v2  ;;  %1189 = vmatpush.bf16.msra.mxu3 %v3386_v35  ;;  %v3479_v35 = vld [vmem:[#allocation7 + $0x114] sm:$0xf0] }
  0xe1   :  { %v392_v7 = vpop.f32.mrf.mxu2  ;;  %1155 = vmatpush.bf16.msra.mxu1 %v3358_v45  ;;  %v3482_v36 = vor.u32 %v4408_v33, %v3479_v35  ;;  %v4405_v45 = vld [vmem:[#allocation7 + $0xf4] sm:$0xf]  ;;  %v3509_v35 = vld [vmem:[#allocation7 + $0x140] sm:$0xf] }
  0xe2   :  { %v3426_v7 = vor.u32 %v4395_v6, %v3425_v5  ;;  %v3441_v5 = vld [vmem:[#allocation7 + $0xc0] sm:$0xf]  ;;  %v4400_v6 = vld [vmem:[#allocation7 + $0xc8] sm:$0xf0] }
  0xe3   :  { %v3442_v9 = vor.u32 %v4400_v6, %v3441_v5 }
  0xe4   :  { %1190 = vmatpush.bf16.msra.mxu3 %v3374_v41 }
  0xe8   :  { %752 = vmatmul.bf16.gmra.mxu1 %v457_v16  ;;  %1191 = vmatpush.bf16.msra.mxu3 %v3362_v47  ;;  %v3467_v47 = vld [vmem:[#allocation7 + $0xfc] sm:$0xf0] }
  0xec   :  { %1192 = vmatpush.bf16.msra.mxu3 %v3350_v53 }
  0xef   :  { %783 = vmatmul.bf16.vlgmr.msrb.gmra.mxu3 %v453_v49  ;;  %v4376_v49 = vld [vmem:[#allocation7 + $0x8] sm:$0xf0] }
  0xf0   :  { %801 = vmatmul.bf16.vlgmr.msra.gmra.mxu0 %v454_v58  ;;  %v3346_v51 = vor.u32 %v4376_v49, %v3345_v48  ;;  %v3527_v58 = vld [vmem:[#allocation7 + $0x174] sm:$0xf0]  ;;  %v3470_v48 = vor.u32 %v4405_v45, %v3467_v47  ;;  %v4410_v47 = vld [vmem:[#allocation7 + $0x118] sm:$0xf0] }
  0xf1   :  { %v3530_v59 = vor.u32 %v4420_v56, %v3527_v58  ;;  %v3377_v49 = vld [vmem:[#allocation7 + $0x38] sm:$0xf]  ;;  %v4403_v56 = vld [vmem:[#allocation7 + $0xe0] sm:$0xf0] }
  0xf2   :  { %1156 = vmatpush.bf16.msra.mxu1 %v3346_v51  ;;  %v3378_v52 = vor.u32 %v4383_v50, %v3377_v49 }
  0xf3   :  { %1203 = vmatpush.bf16.msrb.mxu0 %v3530_v59  ;;  %v3454_v59 = vor.u32 %v4403_v56, %v3453_v55 }
  0xf6   :  { %1221 = vmatpush.bf16.msrb.mxu1 %v3438_v62  ;;  %v3365_v62 = vld [vmem:[#allocation7 + $0x20] sm:$0xf] }
  0xf7   :  { %1204 = vmatpush.bf16.msrb.mxu0 %v3518_v4 }
  0xfa   :  { %1222 = vmatpush.bf16.msrb.mxu1 %v3426_v7  ;;  %v4399_v7 = vld [vmem:[#allocation7 + $0xc4] sm:$0xf] }
  0xfb   :  { %1205 = vmatpush.bf16.msrb.mxu0 %v3506_v13  ;;  %v4377_v13 = vld [vmem:[#allocation7 + $0x10] sm:$0xf0] }
  0xfe   :  { %1223 = vmatpush.bf16.msrb.mxu1 %v3414_v17 }
  0xff   :  { %788 = vmatmul.bf16.gmra.mxu3 %v456_v2  ;;  %v3514_v2 = vor.u32 %v4418_v0, %v3513_v63  ;;  %1206 = vmatpush.bf16.msrb.mxu0 %v3494_v24  ;;  %v4380_v63 = vld [vmem:[#allocation7 + $0x28] sm:$0xf0]  ;;  %v3534_v24 = vor.u32 %v4422_v20, %v3533_v19  ;;  %v3593_v19 = vld [vmem:[#allocation8 + $0x70] sm:$0xf]  ;;  %v4438_v20 = vld [vmem:[#allocation8 + $0x74] sm:$0xf0] }
 0x100   :  { %806 = vmatmul.bf16.gmra.mxu0 %v457_v16  ;;  %v3366_v4 = vor.u32 %v4380_v63, %v3365_v62  ;;  %v3449_v63 = vld [vmem:[#allocation7 + $0xc8] sm:$0xf] }
 0x101   :  { %1168 = vmatpush.bf16.msra.mxu2 %v3514_v2 }
 0x102   :  { %1224 = vmatpush.bf16.msrb.mxu1 %v3402_v28  ;;  %v3521_v28 = vld [vmem:[#allocation7 + $0x158] sm:$0xf] }
 0x103   :  { %1207 = vmatpush.bf16.msrb.mxu0 %v3482_v36  ;;  %v4416_v36 = vld [vmem:[#allocation7 + $0x148] sm:$0xf0] }
 0x105   :  { %1169 = vmatpush.bf16.msra.mxu2 %v3502_v11  ;;  %v3446_v11 = vor.u32 %v4399_v7, %v3443_v10 }
 0x106   :  { %1225 = vmatpush.bf16.msrb.mxu1 %v3390_v42 }
 0x107   :  { %1208 = vmatpush.bf16.msrb.mxu0 %v3470_v48 }
 0x109   :  { %1170 = vmatpush.bf16.msra.mxu2 %v3490_v22 }
 0x10a   :  { %1226 = vmatpush.bf16.msrb.mxu1 %v3378_v52  ;;  %v3473_v52 = vld [vmem:[#allocation7 + $0xf8] sm:$0xf] }
 0x10b   :  { %1209 = vmatpush.bf16.msrb.mxu0 %v3458_v61 }
 0x10d   :  { %1171 = vmatpush.bf16.msra.mxu2 %v3478_v34 }
 0x10e   :  { %1227 = vmatpush.bf16.msrb.mxu1 %v3366_v4 }
 0x10f   :  { %1210 = vmatpush.bf16.msrb.mxu0 %v3446_v11 }
 0x111   :  { %1172 = vmatpush.bf16.msra.mxu2 %v3466_v46  ;;  %v3485_v46 = vld [vmem:[#allocation7 + $0x110] sm:$0xf] }
 0x112   :  { %v3486_v49 = vor.u32 %v4410_v47, %v3485_v46  ;;  %v4446_v46 = vld [vmem:[#allocation8 + $0xb4] sm:$0xf0] }
 0x115   :  { %1173 = vmatpush.bf16.msra.mxu2 %v3454_v59 }
 0x119   :  { %1174 = vmatpush.bf16.msra.mxu2 %v3442_v9 }
 0x11d   :  { %1239 = vmatpush.bf16.msrb.mxu2 %v3534_v24  ;;  %v3595_v24 = vld [vmem:[#allocation8 + $0x78] sm:$0xf0] }
 0x14d   :  { %v730_v16 = vpop.f32.mrf.mxu0 }
 0x152   :  { %v712_v29 = vpop.f32.mrf.mxu3  ;;  %v4968_v30 = vpop.f32.mrf.mxu2 }
 0x153   :  { %v713_v39 = vadd.f32 %v712_v29, %v4966_v27  ;;  %v4419_v29 = vld [vmem:[#allocation7 + $0x160] sm:$0xf0]  ;;  %v767_v50 = vadd.f32 %v4968_v30, %v460_v44 }
 0x154   :  { %v3522_v32 = vor.u32 %v4419_v29, %v3521_v28  ;;  %v4450_v28 = vld [vmem:[#allocation8 + $0xd4] sm:$0xf0] }
 0x155   :  { %v732_v40 = vpop.f32.mrf.mxu0  ;;  %v748_v41 = vpop.f32.mrf.mxu1  ;;  %v731_v51 = vadd.f32 %v730_v16, %v713_v39  ;;  %v3354_v16 = vor.u32 %v4377_v13, %v3353_v12  ;;  %v4413_v39 = vld [vmem:[#allocation7 + $0x130] sm:$0xf0]  ;;  %v3657_v13 = vld [vmem:[#allocation8 + $0xf0] sm:$0xf] }
 0x156   :  { %1240 = vmatpush.bf16.msrb.mxu2 %v3522_v32  ;;  %v3498_v42 = vor.u32 %v4413_v39, %v3497_v38  ;;  %v4436_v32 = vld [vmem:[#allocation8 + $0x64] sm:$0xf0]  ;;  %v3577_v38 = vld [vmem:[#allocation8 + $0x50] sm:$0xf] }
 0x157   :  { %v749_v0 = vadd.f32 %v748_v41, %v731_v51  ;;  %1228 = vmatpush.bf16.msrb.mxu1 %v3354_v16  ;;  %v3649_v16 = vld [vmem:[#allocation8 + $0xe0] sm:$0xf] }
 0x159   :  { %v811_v14 = vmax.f32 %v749_v0, 0.0  ;;  %v4401_v0 = vld [vmem:[#allocation7 + $0xd0] sm:$0xf0] }
 0x15a   :  { %v714_v53 = vpop.f32.mrf.mxu3  ;;  %v4971_v54 = vpop.f32.mrf.mxu2 }
 0x15b   :  { %v715_v58 = vadd.f32 %v714_v53, %v4966_v27  ;;  %v4407_v53 = vld [vmem:[#allocation7 + $0x100] sm:$0xf0]  ;;  %v769_v21 = vadd.f32 %v4971_v54, %v460_v44 }
 0x15c   :  { %v3474_v55 = vor.u32 %v4407_v53, %v3473_v52  ;;  %v3571_v52 = vld [vmem:[#allocation8 + $0x48] sm:$0xf0] }
 0x15d   :  { %v735_v1 = vpop.f32.mrf.mxu0  ;;  %v733_v2 = vadd.f32 %v732_v40, %v715_v58  ;;  %v750_v3 = vpop.f32.mrf.mxu1  ;;  %v4404_v58 = vld [vmem:[#allocation7 + $0xe8] sm:$0xf0] }
 0x15e   :  { %v3462_v60 = vor.u32 %v4404_v58, %v3461_v57  ;;  %v4444_v57 = vld [vmem:[#allocation8 + $0xa4] sm:$0xf0] }
 0x15f   :  { %v751_v8 = vadd.f32 %v750_v3, %v733_v2  ;;  %v3450_v2 = vor.u32 %v4401_v0, %v3449_v63  ;;  %v3609_v0 = vld [vmem:[#allocation8 + $0x90] sm:$0xf] }
 0x161   :  { %v813_v15 = vmax.f32 %v751_v8, 0.0 }
 0x162   :  { %v717_v17 = vpop.f32.mrf.mxu3  ;;  %v4974_v18 = vpop.f32.mrf.mxu2 }
 0x163   :  { %v4976_v22 = vpack.c.bf16 %v813_v15, %v811_v14  ;;  %v718_v23 = vadd.f32 %v717_v17, %v4966_v27  ;;  %v3510_v27 = vor.u32 %v4416_v36, %v3509_v35  ;;  %v772_v7 = vadd.f32 %v4974_v18, %v460_v44  ;;  %v4454_v14 = vld [vmem:[#allocation8 + $0xf4] sm:$0xf0]  ;;  %v4452_v17 = vld [vmem:[#allocation8 + $0xe4] sm:$0xf0]  ;;  %v3587_v35 = vld [vmem:[#allocation8 + $0x68] sm:$0xf0] }
 0x164   :  { %v3658_v15 = vor.u32 %v4454_v14, %v3657_v13  ;;  %v3650_v18 = vor.u32 %v4452_v17, %v3649_v16  ;;  %v4426_v13 = vld [vmem:[#allocation8 + $0x14] sm:$0xf0]  ;;  %v4425_v14 = vld [vmem:[#allocation8 + $0x14] sm:$0xf]  ;;  %v3547_v16 = vld [vmem:[#allocation8 + $0x18] sm:$0xf0] }
 0x165   :  { %v737_v25 = vpop.f32.mrf.mxu0  ;;  %1157 = vmatmul.bf16.vlgmr.msra.gmra.mxu1 %v4976_v22  ;;  %1193 = vmatmul.bf16.vlgmr.msra.gmra.mxu3 %v4976_v22  ;;  %v753_v26 = vpop.f32.mrf.mxu1  ;;  %v736_v31 = vadd.f32 %v735_v1, %v718_v23  ;;  %v3594_v23 = vor.u32 %v4438_v20, %v3593_v19  ;;  %v3550_v17 = vor.u32 %v4425_v14, %v3547_v16  ;;  %v3537_v19 = vld [vmem:[#allocation8] sm:$0xf]  ;;  %v4424_v20 = vld [vmem:[#allocation8 + $0x4] sm:$0xf0]  ;;  %v4461_v14 = vld [vmem:[#allocation8 + $0x134] sm:$0xf] }
 0x166   :  { %1241 = vmatpush.bf16.msrb.mxu2 %v3510_v27  ;;  %1584 = vmatpush.bf16.msra.mxu0 %v3658_v15  ;;  %v4448_v27 = vld [vmem:[#allocation8 + $0xc4] sm:$0xf0] }
 0x167   :  { %v754_v37 = vadd.f32 %v753_v26, %v736_v31  ;;  %1566 = vmatpush.bf16.msrb.mxu3 %v3594_v23  ;;  %v3641_v26 = vld [vmem:[#allocation8 + $0xd0] sm:$0xf]  ;;  %v3585_v31 = vld [vmem:[#allocation8 + $0x60] sm:$0xf]  ;;  %v3538_v23 = vor.u32 %v4424_v20, %v3537_v19 }
 0x168   :  { %v3642_v29 = vor.u32 %v4450_v28, %v3641_v26  ;;  %v4453_v28 = vld [vmem:[#allocation8 + $0xf4] sm:$0xf] }
 0x169   :  { %v815_v43 = vmax.f32 %v754_v37, 0.0  ;;  %v3633_v37 = vld [vmem:[#allocation8 + $0xc0] sm:$0xf] }
 0x16a   :  { %v719_v33 = vpop.f32.mrf.mxu3  ;;  %v773_v34 = vpop.f32.mrf.mxu2  ;;  %1242 = vmatpush.bf16.msrb.mxu2 %v3498_v42  ;;  %1585 = vmatpush.bf16.msra.mxu0 %v3650_v18  ;;  %v3634_v39 = vor.u32 %v4448_v27, %v3633_v37  ;;  %v3579_v42 = vld [vmem:[#allocation8 + $0x58] sm:$0xf0] }
 0x16b   :  { %v884_v48 = vpack.c.bf16 %v815_v43, %v815_v43  ;;  %v4435_v33 = vld [vmem:[#allocation8 + $0x64] sm:$0xf]  ;;  %v3586_v34 = vor.u32 %v4436_v32, %v3585_v31  ;;  %v3721_v31 = vld [vmem:[#allocation8 + $0x170] sm:$0xf] }
 0x16c   :  { %v3590_v36 = vor.u32 %v4435_v33, %v3587_v35  ;;  %v4470_v33 = vld [vmem:[#allocation8 + $0x174] sm:$0xf0]  ;;  %v3723_v35 = vld [vmem:[#allocation8 + $0x178] sm:$0xf0] }
 0x16d   :  { %v802_v40 = vpop.f32.mrf.mxu0  ;;  %v755_v41 = vpop.f32.mrf.mxu1  ;;  %1567 = vmatpush.bf16.msrb.mxu3 %v3586_v34  ;;  %v4469_v34 = vld [vmem:[#allocation8 + $0x174] sm:$0xf] }
 0x16e   :  { %1243 = vmatpush.bf16.msrb.mxu2 %v3486_v49  ;;  %1586 = vmatpush.bf16.msra.mxu0 %v3642_v29  ;;  %v4433_v41 = vld [vmem:[#allocation8 + $0x54] sm:$0xf]  ;;  %v4432_v49 = vld [vmem:[#allocation8 + $0x44] sm:$0xf0]  ;;  %v3659_v29 = vld [vmem:[#allocation8 + $0xf8] sm:$0xf0]  ;;  %v3726_v37 = vor.u32 %v4469_v34, %v3723_v35 }
 0x16f   :  { %v3582_v44 = vor.u32 %v4433_v41, %v3579_v42  ;;  %v3662_v32 = vor.u32 %v4453_v28, %v3659_v29  ;;  %v4468_v42 = vld [vmem:[#allocation8 + $0x164] sm:$0xf0]  ;;  %v3681_v28 = vld [vmem:[#allocation8 + $0x120] sm:$0xf] }
 0x172   :  { %v784_v45 = vpop.f32.mrf.mxu3  ;;  %1244 = vmatpush.bf16.msrb.mxu2 %v3474_v55  ;;  %1587 = vmatpush.bf16.msra.mxu0 %v3634_v39  ;;  %v3651_v39 = vld [vmem:[#allocation8 + $0xe8] sm:$0xf0] }
 0x173   :  { %v785_v56 = vadd.f32 %v784_v45, %v767_v50  ;;  %v3625_v45 = vld [vmem:[#allocation8 + $0xb0] sm:$0xf]  ;;  %v4431_v50 = vld [vmem:[#allocation8 + $0x44] sm:$0xf] }
 0x174   :  { %v3626_v47 = vor.u32 %v4446_v46, %v3625_v45  ;;  %v3574_v55 = vor.u32 %v4431_v50, %v3571_v52  ;;  %v4466_v52 = vld [vmem:[#allocation8 + $0x154] sm:$0xf0] }
 0x175   :  { %v804_v51 = vpop.f32.mrf.mxu0  ;;  %1162 = vmatmul.bf16.gmra.mxu1 %v884_v48  ;;  %1198 = vmatmul.bf16.gmra.mxu3 %v884_v48  ;;  %v803_v61 = vadd.f32 %v802_v40, %v785_v56  ;;  %v4434_v40 = vld [vmem:[#allocation8 + $0x54] sm:$0xf0]  ;;  %v3617_v56 = vld [vmem:[#allocation8 + $0xa0] sm:$0xf] }
 0x176   :  { %1245 = vmatpush.bf16.msrb.mxu2 %v3462_v60  ;;  %v3578_v43 = vor.u32 %v4434_v40, %v3577_v38  ;;  %1588 = vmatpush.bf16.msra.mxu0 %v3626_v47  ;;  %v3618_v58 = vor.u32 %v4444_v57, %v3617_v56  ;;  %v4451_v38 = vld [vmem:[#allocation8 + $0xe4] sm:$0xf]  ;;  %v3713_v40 = vld [vmem:[#allocation8 + $0x160] sm:$0xf]  ;;  %v3707_v57 = vld [vmem:[#allocation8 + $0x158] sm:$0xf0] }
 0x177   :  { %v812_v3 = vmax.f32 %v803_v61, 0.0  ;;  %v4429_v61 = vld [vmem:[#allocation8 + $0x34] sm:$0xf]  ;;  %v3654_v41 = vor.u32 %v4451_v38, %v3651_v39  ;;  %v3714_v46 = vor.u32 %v4468_v42, %v3713_v40  ;;  %v3611_v38 = vld [vmem:[#allocation8 + $0x98] sm:$0xf0] }
 0x178   :  { %1568 = vmatpush.bf16.msrb.mxu3 %v3578_v43  ;;  %v4467_v43 = vld [vmem:[#allocation8 + $0x164] sm:$0xf] }
 0x17a   :  { %v786_v59 = vpop.f32.mrf.mxu3  ;;  %1246 = vmatpush.bf16.msrb.mxu2 %v3450_v2  ;;  %1589 = vmatpush.bf16.msra.mxu0 %v3618_v58  ;;  %v5001_v58 = vld [vmem:[%s5165_s6] sm:$0x7] }
 0x17b   :  { %v787_v62 = vadd.f32 %v786_v59, %v769_v21  ;;  %v3561_v21 = vld [vmem:[#allocation8 + $0x30] sm:$0xf]  ;;  %v4430_v59 = vld [vmem:[#allocation8 + $0x34] sm:$0xf0]  ;;  %v5011_v16 = vperm.slane %v5001_v58, 0 }
 0x17c   :  { %v3562_v60 = vor.u32 %v4430_v59, %v3561_v21  ;;  %v4447_v59 = vld [vmem:[#allocation8 + $0xc4] sm:$0xf] }
 0x17d   :  { %v805_v30 = vadd.f32 %v804_v51, %v787_v62  ;;  %v807_v1 = vpop.f32.mrf.mxu0  ;;  %v3563_v62 = vld [vmem:[#allocation8 + $0x38] sm:$0xf0] }
 0x17e   :  { %v3566_v63 = vor.u32 %v4429_v61, %v3563_v62  ;;  %v3697_v61 = vld [vmem:[#allocation8 + $0x140] sm:$0xf] }
 0x17f   :  { %v814_v4 = vmax.f32 %v805_v30, 0.0  ;;  %v4442_v30 = vld [vmem:[#allocation8 + $0x94] sm:$0xf0] }
 0x181   :  { %v883_v5 = vpack.c.bf16 %v814_v4, %v812_v3  ;;  %v3553_v3 = vld [vmem:[#allocation8 + $0x20] sm:$0xf]  ;;  %v4428_v4 = vld [vmem:[#allocation8 + $0x24] sm:$0xf0] }
 0x182   :  { %v789_v6 = vpop.f32.mrf.mxu3 }
 0x183   :  { %1175 = vmatmul.bf16.vlgmr.msra.gmra.mxu2 %v883_v5  ;;  %1211 = vmatmul.bf16.vlgmr.msrb.gmra.mxu0 %v883_v5  ;;  %v790_v54 = vadd.f32 %v789_v6, %v772_v7  ;;  %v3554_v6 = vor.u32 %v4428_v4, %v3553_v3  ;;  %v3555_v7 = vld [vmem:[#allocation8 + $0x28] sm:$0xf0]  ;;  %v5004_v4 = vperm.slane %v5001_v58, 1 }
 0x184   :  { %v3699_v3 = vld [vmem:[#allocation8 + $0x148] sm:$0xf0] }
 0x185   :  { %1229 = vmatmul.bf16.vlgmr.msrb.gmra.mxu1 %v4976_v22  ;;  %v809_v8 = vpop.f32.mrf.mxu0  ;;  %v808_v9 = vadd.f32 %v807_v1, %v790_v54  ;;  %v4437_v22 = vld [vmem:[#allocation8 + $0x74] sm:$0xf]  ;;  %v3610_v1 = vor.u32 %v4442_v30, %v3609_v0  ;;  %v4464_v30 = vld [vmem:[#allocation8 + $0x144] sm:$0xf0] }
 0x186   :  { %v3598_v25 = vor.u32 %v4437_v22, %v3595_v24  ;;  %v4423_v22 = vld [vmem:[#allocation8 + $0x4] sm:$0xf]  ;;  %v3539_v24 = vld [vmem:[#allocation8 + $0x8] sm:$0xf0] }
 0x187   :  { %v816_v11 = vmax.f32 %v808_v9, 0.0  ;;  %1590 = vmatpush.bf16.msra.mxu0 %v3610_v1  ;;  %v3601_v9 = vld [vmem:[#allocation8 + $0x80] sm:$0xf]  ;;  %v3542_v26 = vor.u32 %v4423_v22, %v3539_v24  ;;  %v4463_v1 = vld [vmem:[#allocation8 + $0x144] sm:$0xf] }
 0x188   :  { %1620 = vmatpush.bf16.msra.mxu2 %v3598_v25 }
 0x189   :  { %v885_v12 = vpack.c.bf16 %v816_v11, %v816_v11 }
 0x18a   :  { %v791_v10 = vpop.f32.mrf.mxu3 }
 0x18b   :  { %v4440_v10 = vld [vmem:[#allocation8 + $0x84] sm:$0xf0] }
 0x18c   :  { %1621 = vmatpush.bf16.msra.mxu2 %v3590_v36  ;;  %v3602_v11 = vor.u32 %v4440_v10, %v3601_v9  ;;  %v3722_v36 = vor.u32 %v4470_v33, %v3721_v31  ;;  %v3627_v9 = vld [vmem:[#allocation8 + $0xb8] sm:$0xf0]  ;;  %v3689_v10 = vld [vmem:[#allocation8 + $0x130] sm:$0xf]  ;;  %v4459_v33 = vld [vmem:[#allocation8 + $0x124] sm:$0xf] }
 0x18e   :  { %1591 = vmatpush.bf16.msra.mxu0 %v3602_v11  ;;  %1602 = vmatpush.bf16.msra.mxu1 %v3722_v36 }
 0x190   :  { %1622 = vmatpush.bf16.msra.mxu2 %v3582_v44  ;;  %v3715_v44 = vld [vmem:[#allocation8 + $0x168] sm:$0xf0] }
 0x191   :  { %v3718_v47 = vor.u32 %v4467_v43, %v3715_v44  ;;  %v3673_v43 = vld [vmem:[#allocation8 + $0x110] sm:$0xf]  ;;  %v4458_v44 = vld [vmem:[#allocation8 + $0x114] sm:$0xf0] }
 0x192   :  { %1656 = vmatpush.bf16.msrb.mxu0 %v3726_v37  ;;  %1603 = vmatpush.bf16.msra.mxu1 %v3714_v46  ;;  %v3683_v37 = vld [vmem:[#allocation8 + $0x128] sm:$0xf0] }
 0x193   :  { %1180 = vmatmul.bf16.gmra.mxu2 %v885_v12  ;;  %1216 = vmatmul.bf16.gmra.mxu0 %v885_v12 }
 0x194   :  { %1623 = vmatpush.bf16.msra.mxu2 %v3574_v55  ;;  %v4465_v55 = vld [vmem:[#allocation8 + $0x154] sm:$0xf] }
 0x195   :  { %1234 = vmatmul.bf16.gmra.mxu1 %v884_v48  ;;  %v3569_v48 = vld [vmem:[#allocation8 + $0x40] sm:$0xf]  ;;  %v3710_v21 = vor.u32 %v4465_v55, %v3707_v57  ;;  %v3603_v57 = vld [vmem:[#allocation8 + $0x88] sm:$0xf0] }
 0x196   :  { %v3570_v51 = vor.u32 %v4432_v49, %v3569_v48  ;;  %v4449_v48 = vld [vmem:[#allocation8 + $0xd4] sm:$0xf]  ;;  %v3643_v49 = vld [vmem:[#allocation8 + $0xd8] sm:$0xf0]  ;;  %1657 = vmatpush.bf16.msrb.mxu0 %v3718_v47 }
 0x197   :  { %v3646_v50 = vor.u32 %v4449_v48, %v3643_v49  ;;  %v3674_v48 = vor.u32 %v4458_v44, %v3673_v43  ;;  %v3675_v49 = vld [vmem:[#allocation8 + $0x118] sm:$0xf0]  ;;  %v3909_v44 = vld [vmem:[#allocation10 + $0x168] sm:$0xf] }
 0x198   :  { %1569 = vmatpush.bf16.msrb.mxu3 %v3570_v51  ;;  %1624 = vmatpush.bf16.msra.mxu2 %v3566_v63  ;;  %v3705_v51 = vld [vmem:[#allocation8 + $0x150] sm:$0xf] }
 0x199   :  { %v3706_v56 = vor.u32 %v4466_v52, %v3705_v51 }
 0x19a   :  { %1658 = vmatpush.bf16.msrb.mxu0 %v3710_v21  ;;  %v3665_v21 = vld [vmem:[#allocation8 + $0x100] sm:$0xf] }
 0x19b   :  { %1604 = vmatpush.bf16.msra.mxu1 %v3706_v56  ;;  %v4439_v56 = vld [vmem:[#allocation8 + $0x84] sm:$0xf] }
 0x19c   :  { %1570 = vmatpush.bf16.msrb.mxu3 %v3562_v60  ;;  %v3635_v60 = vld [vmem:[#allocation8 + $0xc8] sm:$0xf0] }
 0x19d   :  { %v3638_v0 = vor.u32 %v4447_v59, %v3635_v60 }
 0x1a0   :  { %1571 = vmatpush.bf16.msrb.mxu3 %v3554_v6  ;;  %v3702_v6 = vor.u32 %v4463_v1, %v3699_v3 }
 0x1a2   :  { %1659 = vmatpush.bf16.msrb.mxu0 %v3702_v6 }
 0x1a3   :  { %1247 = vmatmul.bf16.vlgmr.msrb.gmra.mxu2 %v883_v5  ;;  %v4427_v5 = vld [vmem:[#allocation8 + $0x24] sm:$0xf] }
 0x1a4   :  { %v3558_v8 = vor.u32 %v4427_v5, %v3555_v7  ;;  %v3698_v5 = vor.u32 %v4464_v30, %v3697_v61  ;;  %v3606_v61 = vor.u32 %v4439_v56, %v3603_v57  ;;  %v3667_v30 = vld [vmem:[#allocation8 + $0x108] sm:$0xf0]  ;;  %v3897_v56 = vld [vmem:[#allocation10 + $0x150] sm:$0xf] }
 0x1a6   :  { %1625 = vmatpush.bf16.msra.mxu2 %v3558_v8  ;;  %1605 = vmatpush.bf16.msra.mxu1 %v3698_v5  ;;  %v4445_v8 = vld [vmem:[#allocation8 + $0xb4] sm:$0xf] }
 0x1aa   :  { %1626 = vmatpush.bf16.msra.mxu2 %v3550_v17 }
 0x1ae   :  { %1627 = vmatpush.bf16.msra.mxu2 %v3542_v26  ;;  %v4443_v26 = vld [vmem:[#allocation8 + $0xa4] sm:$0xf] }
 0x1b3   :  { %1252 = vmatmul.bf16.gmra.mxu2 %v885_v12  ;;  %v3545_v12 = vld [vmem:[#allocation8 + $0x10] sm:$0xf] }
 0x1b4   :  { %v3546_v15 = vor.u32 %v4426_v13, %v3545_v12  ;;  %v3630_v12 = vor.u32 %v4445_v8, %v3627_v9  ;;  %v4462_v13 = vld [vmem:[#allocation8 + $0x134] sm:$0xf0] }
 0x1b5   :  { %v3690_v19 = vor.u32 %v4462_v13, %v3689_v10 }
 0x1b6   :  { %1572 = vmatpush.bf16.msrb.mxu3 %v3546_v15  ;;  %v3691_v15 = vld [vmem:[#allocation8 + $0x138] sm:$0xf0] }
 0x1b7   :  { %v3694_v20 = vor.u32 %v4461_v14, %v3691_v15  ;;  %1606 = vmatpush.bf16.msra.mxu1 %v3690_v19  ;;  %v889_v19 = vperm.slane %v5001_v58, 2  ;;  %v3813_v58 = vld [vmem:[#allocation10 + $0xa8] sm:$0xf] }
 0x1b9   :  { %1660 = vmatpush.bf16.msrb.mxu0 %v3694_v20 }
 0x1ba   :  { %1573 = vmatpush.bf16.msrb.mxu3 %v3538_v23 }
 0x1be   :  { %1638 = vmatpush.bf16.msra.mxu3 %v3662_v32  ;;  %v4460_v32 = vld [vmem:[#allocation8 + $0x124] sm:$0xf0] }
 0x1bf   :  { %v3682_v36 = vor.u32 %v4460_v32, %v3681_v28 }
 0x1c1   :  { %1607 = vmatpush.bf16.msra.mxu1 %v3682_v36 }
 0x1c2   :  { %1639 = vmatpush.bf16.msra.mxu3 %v3654_v41  ;;  %v3686_v41 = vor.u32 %v4459_v33, %v3683_v37  ;;  %v3815_v37 = vld [vmem:[#allocation10 + $0xb4] sm:$0xf0] }
 0x1c4   :  { %1661 = vmatpush.bf16.msrb.mxu0 %v3686_v41 }
 0x1c5   :  { %1608 = vmatpush.bf16.msra.mxu1 %v3674_v48  ;;  %v4486_v48 = vld [vmem:[#allocation10 + $0x7c] sm:$0xf] }
 0x1c6   :  { %1640 = vmatpush.bf16.msra.mxu3 %v3646_v50 }
 0x1ca   :  { %1641 = vmatpush.bf16.msra.mxu3 %v3638_v0 }
 0x1ce   :  { %1642 = vmatpush.bf16.msra.mxu3 %v3630_v12 }
 0x1e2   :  { %v4986_v53 = vpop.f32.mrf.mxu1 }
 0x1e3   :  { %v1159_v34 = vadd.f32 %v4986_v53, %v5011_v16 }
 0x1e8   :  { %v4988_v2 = vpop.f32.mrf.mxu3 }
 0x1e9   :  { %v1195_v11 = vadd.f32 %v4988_v2, %v5004_v4  ;;  %v3619_v2 = vld [vmem:[#allocation8 + $0xa8] sm:$0xf0] }
 0x1ea   :  { %v4990_v54 = vpop.f32.mrf.mxu1  ;;  %v3622_v31 = vor.u32 %v4443_v26, %v3619_v2 }
 0x1eb   :  { %v1161_v46 = vadd.f32 %v4990_v54, %v5011_v16  ;;  %v4456_v54 = vld [vmem:[#allocation8 + $0x104] sm:$0xf0] }
 0x1ec   :  { %1643 = vmatpush.bf16.msra.mxu3 %v3622_v31  ;;  %v3666_v0 = vor.u32 %v4456_v54, %v3665_v21  ;;  %v4514_v21 = vld [vmem:[#allocation10 + $0x158] sm:$0xf0] }
 0x1ed   :  { %v3898_v54 = vor.u32 %v4514_v21, %v3897_v56  ;;  %v3851_v56 = vld [vmem:[#allocation10 + $0xfc] sm:$0xf0] }
 0x1ee   :  { %1609 = vmatpush.bf16.msra.mxu1 %v3666_v0  ;;  %v3779_v0 = vld [vmem:[#allocation10 + $0x6c] sm:$0xf0] }
 0x1f0   :  { %v4992_v18 = vpop.f32.mrf.mxu3 }
 0x1f1   :  { %v1197_v22 = vadd.f32 %v4992_v18, %v5004_v4  ;;  %v4441_v18 = vld [vmem:[#allocation8 + $0x94] sm:$0xf] }
 0x1f2   :  { %v4994_v25 = vpop.f32.mrf.mxu1  ;;  %v3614_v42 = vor.u32 %v4441_v18, %v3611_v38  ;;  %v3801_v38 = vld [vmem:[#allocation10 + $0x90] sm:$0xf] }
 0x1f3   :  { %v1164_v10 = vadd.f32 %v4994_v25, %v5011_v16 }
 0x1f4   :  { %1644 = vmatpush.bf16.msra.mxu3 %v3614_v42  ;;  %v3803_v42 = vld [vmem:[#allocation10 + $0x9c] sm:$0xf0] }
 0x1f8   :  { %v4996_v27 = vpop.f32.mrf.mxu3  ;;  %1645 = vmatpush.bf16.msra.mxu3 %v3606_v61 }
 0x1f9   :  { %v1200_v1 = vadd.f32 %v4996_v27, %v5004_v4 }
 0x1fa   :  { %v1165_v45 = vpop.f32.mrf.mxu1 }
 0x1fb   :  { %v4457_v45 = vld [vmem:[#allocation8 + $0x114] sm:$0xf] }
 0x1fc   :  { %v3678_v51 = vor.u32 %v4457_v45, %v3675_v49  ;;  %v4517_v45 = vld [vmem:[#allocation10 + $0x170] sm:$0xf0]  ;;  %v3791_v49 = vld [vmem:[#allocation10 + $0x84] sm:$0xf0] }
 0x1fe   :  { %1662 = vmatpush.bf16.msrb.mxu0 %v3678_v51  ;;  %v3794_v51 = vor.u32 %v4486_v48, %v3791_v49  ;;  %v4472_v48 = vld [vmem:[#allocation10 + $0x8] sm:$0xf0]  ;;  %v4471_v49 = vld [vmem:[#allocation10 + $0x4] sm:$0xf] }
 0x200   :  { %v1201_v62 = vpop.f32.mrf.mxu3  ;;  %v1212_v63 = vpop.f32.mrf.mxu0 }
 0x201   :  { %v1213_v23 = vadd.f32 %v1212_v63, %v1195_v11  ;;  %v4455_v62 = vld [vmem:[#allocation8 + $0x104] sm:$0xf] }
 0x202   :  { %v5006_v7 = vpop.f32.mrf.mxu1  ;;  %v3670_v5 = vor.u32 %v4455_v62, %v3667_v30  ;;  %v4513_v30 = vld [vmem:[#allocation10 + $0x154] sm:$0xf] }
 0x203   :  { %v1258_v39 = vmax.f32 %v1213_v23, 0.0  ;;  %v1231_v20 = vadd.f32 %v5006_v7, %v889_v19  ;;  %v4493_v7 = vld [vmem:[#allocation10 + $0xb0] sm:$0xf0] }
 0x204   :  { %1663 = vmatpush.bf16.msrb.mxu0 %v3670_v5  ;;  %v3814_v36 = vor.u32 %v4493_v7, %v3813_v58  ;;  %v3861_v58 = vld [vmem:[#allocation10 + $0x108] sm:$0xf]  ;;  %v4505_v7 = vld [vmem:[#allocation10 + $0x110] sm:$0xf0] }
 0x206   :  { %v1176_v17 = vpop.f32.mrf.mxu2  ;;  %2012 = vmatpush.bf16.msrb.mxu1 %v3814_v36  ;;  %v3862_v36 = vor.u32 %v4505_v7, %v3861_v58 }
 0x207   :  { %v1177_v47 = vadd.f32 %v1176_v17, %v1159_v34 }
 0x208   :  { %v1214_v24 = vpop.f32.mrf.mxu0 }
 0x209   :  { %v1215_v29 = vadd.f32 %v1214_v24, %v1197_v22  ;;  %v1257_v59 = vmax.f32 %v1177_v47, 0.0  ;;  %v3910_v47 = vor.u32 %v4517_v45, %v3909_v44  ;;  %v3849_v45 = vld [vmem:[#allocation10 + $0xf0] sm:$0xf] }
 0x20a   :  { %v5017_v35 = vpop.f32.mrf.mxu1 }
 0x20b   :  { %v1261_v40 = vmax.f32 %v1215_v29, 0.0  ;;  %v1233_v22 = vadd.f32 %v5017_v35, %v889_v19  ;;  %v4492_v35 = vld [vmem:[#allocation10 + $0xac] sm:$0xf]  ;;  %2030 = vmatpush.bf16.msrb.mxu2 %v3910_v47  ;;  %v3729_v47 = vld [vmem:[#allocation10] sm:$0xf] }
 0x20c   :  { %v3818_v18 = vor.u32 %v4492_v35, %v3815_v37  ;;  %v3741_v35 = vld [vmem:[#allocation10 + $0x18] sm:$0xf]  ;;  %v4475_v37 = vld [vmem:[#allocation10 + $0x20] sm:$0xf0] }
 0x20d   :  { %v1316_v53 = vpack.c.bf16 %v1261_v40, %v1258_v39  ;;  %v4490_v39 = vld [vmem:[#allocation10 + $0x98] sm:$0xf0]  ;;  %v4489_v40 = vld [vmem:[#allocation10 + $0x94] sm:$0xf] }
 0x20e   :  { %v1178_v50 = vpop.f32.mrf.mxu2  ;;  %v3802_v41 = vor.u32 %v4490_v39, %v3801_v38  ;;  %v3806_v43 = vor.u32 %v4489_v40, %v3803_v42  ;;  %v3743_v38 = vld [vmem:[#allocation10 + $0x24] sm:$0xf0]  ;;  %v3742_v39 = vor.u32 %v4475_v37, %v3741_v35  ;;  %v3863_v42 = vld [vmem:[#allocation10 + $0x114] sm:$0xf0]  ;;  %v3773_v37 = vld [vmem:[#allocation10 + $0x50] sm:$0xf] }
 0x20f   :  { %v1179_v52 = vadd.f32 %v1178_v50, %v1161_v46  ;;  %1592 = vmatmul.bf16.vlgmr.msra.gmra.mxu0 %v1316_v53  ;;  %v3789_v46 = vld [vmem:[#allocation10 + $0x78] sm:$0xf]  ;;  %2031 = vmatpush.bf16.msrb.mxu2 %v3898_v54  ;;  %v4499_v54 = vld [vmem:[#allocation10 + $0xe0] sm:$0xf0] }
 0x210   :  { %v1217_v55 = vpop.f32.mrf.mxu0  ;;  %2013 = vmatpush.bf16.msrb.mxu1 %v3802_v41  ;;  %v4504_v41 = vld [vmem:[#allocation10 + $0x10c] sm:$0xf] }
 0x211   :  { %v1260_v60 = vmax.f32 %v1179_v52, 0.0  ;;  %v1218_v6 = vadd.f32 %v1217_v55, %v1200_v1  ;;  %v4516_v52 = vld [vmem:[#allocation10 + $0x16c] sm:$0xf]  ;;  %v3911_v55 = vld [vmem:[#allocation10 + $0x174] sm:$0xf0] }
 0x212   :  { %v1235_v63 = vpop.f32.mrf.mxu1  ;;  %v3914_v57 = vor.u32 %v4516_v52, %v3911_v55  ;;  %v4501_v55 = vld [vmem:[#allocation10 + $0xf4] sm:$0xf] }
 0x213   :  { %v1315_v3 = vpack.c.bf16 %v1260_v60, %v1257_v59  ;;  %v1264_v11 = vmax.f32 %v1218_v6, 0.0  ;;  %v1236_v29 = vadd.f32 %v1235_v63, %v889_v19  ;;  %v3777_v59 = vld [vmem:[#allocation10 + $0x60] sm:$0xf]  ;;  %v4484_v60 = vld [vmem:[#allocation10 + $0x68] sm:$0xf0] }
 0x214   :  { %v3778_v62 = vor.u32 %v4484_v60, %v3777_v59  ;;  %v4483_v63 = vld [vmem:[#allocation10 + $0x64] sm:$0xf]  ;;  %2066 = vmatpush.bf16.msra.mxu0 %v3914_v57  ;;  %v3885_v6 = vld [vmem:[#allocation10 + $0x138] sm:$0xf]  ;;  %v3854_v57 = vor.u32 %v4501_v55, %v3851_v56 }
 0x215   :  { %1574 = vmatmul.bf16.vlgmr.msrb.gmra.mxu3 %v1315_v3  ;;  %1628 = vmatmul.bf16.vlgmr.msra.gmra.mxu2 %v1315_v3  ;;  %v1319_v14 = vpack.c.bf16 %v1264_v11, %v1264_v11  ;;  %v3782_v1 = vor.u32 %v4483_v63, %v3779_v0  ;;  %v3899_v3 = vld [vmem:[#allocation10 + $0x15c] sm:$0xf0]  ;;  %v4481_v11 = vld [vmem:[#allocation10 + $0x50] sm:$0xf0]  ;;  %v3837_v60 = vld [vmem:[#allocation10 + $0xd8] sm:$0xf] }
 0x216   :  { %v1181_v8 = vpop.f32.mrf.mxu2  ;;  %2048 = vmatpush.bf16.msrb.mxu3 %v3818_v18  ;;  %v3902_v5 = vor.u32 %v4513_v30, %v3899_v3  ;;  %v4474_v18 = vld [vmem:[#allocation10 + $0x1c] sm:$0xf]  ;;  %v3838_v63 = vor.u32 %v4499_v54, %v3837_v60  ;;  %v3839_v0 = vld [vmem:[#allocation10 + $0xe4] sm:$0xf0]  ;;  %v3821_v30 = vld [vmem:[#allocation10 + $0xb0] sm:$0xf] }
 0x217   :  { %v1182_v13 = vadd.f32 %v1181_v8, %v1164_v10  ;;  %v4511_v8 = vld [vmem:[#allocation10 + $0x140] sm:$0xf0]  ;;  %v3746_v40 = vor.u32 %v4474_v18, %v3743_v38  ;;  %v4482_v18 = vld [vmem:[#allocation10 + $0x58] sm:$0xf0]  ;;  %v3893_v38 = vld [vmem:[#allocation10 + $0x140] sm:$0xf] }
 0x218   :  { %v1219_v9 = vpop.f32.mrf.mxu0  ;;  %2067 = vmatpush.bf16.msra.mxu0 %v3902_v5  ;;  %v3886_v10 = vor.u32 %v4511_v8, %v3885_v6  ;;  %v3825_v8 = vld [vmem:[#allocation10 + $0xc0] sm:$0xf]  ;;  %v4476_v60 = vld [vmem:[#allocation10 + $0x28] sm:$0xf0]  ;;  %v3869_v54 = vld [vmem:[#allocation10 + $0x110] sm:$0xf] }
 0x219   :  { %v1263_v17 = vmax.f32 %v1182_v13, 0.0  ;;  %v3765_v9 = vld [vmem:[#allocation10 + $0x48] sm:$0xf]  ;;  %v3767_v13 = vld [vmem:[#allocation10 + $0x54] sm:$0xf0] }
 0x21a   :  { %v1237_v12 = vpop.f32.mrf.mxu1  ;;  %2049 = vmatpush.bf16.msrb.mxu3 %v3806_v43  ;;  %2032 = vmatpush.bf16.msrb.mxu2 %v3886_v10  ;;  %v3866_v43 = vor.u32 %v4504_v41, %v3863_v42  ;;  %v4495_v10 = vld [vmem:[#allocation10 + $0xc4] sm:$0xf]  ;;  %v3761_v41 = vld [vmem:[#allocation10 + $0x38] sm:$0xf] }
 0x21b   :  { %v1318_v27 = vpack.c.bf16 %v1263_v17, %v1263_v17  ;;  %v4480_v12 = vld [vmem:[#allocation10 + $0x4c] sm:$0xf]  ;;  %v4510_v17 = vld [vmem:[#allocation10 + $0x13c] sm:$0xf]  ;;  %v4479_v42 = vld [vmem:[#allocation10 + $0x40] sm:$0xf0] }
 0x21e   :  { %v1183_v15 = vpop.f32.mrf.mxu2  ;;  %2050 = vmatpush.bf16.msrb.mxu3 %v3794_v51  ;;  %v3730_v51 = vor.u32 %v4472_v48, %v3729_v47  ;;  %v4509_v47 = vld [vmem:[#allocation10 + $0x130] sm:$0xf0] }
 0x21f   :  { %1597 = vmatmul.bf16.gmra.mxu0 %v1319_v14  ;;  %v3770_v15 = vor.u32 %v4480_v12, %v3767_v13  ;;  %v3827_v12 = vld [vmem:[#allocation10 + $0xcc] sm:$0xf0]  ;;  %v3809_v13 = vld [vmem:[#allocation10 + $0x98] sm:$0xf] }
 0x222   :  { %2051 = vmatpush.bf16.msrb.mxu3 %v3782_v1  ;;  %v4494_v1 = vld [vmem:[#allocation10 + $0xb8] sm:$0xf0] }
 0x223   :  { %v3822_v5 = vor.u32 %v4494_v1, %v3821_v30  ;;  %v3737_v30 = vld [vmem:[#allocation10 + $0x8] sm:$0xf]  ;;  %v4473_v1 = vld [vmem:[#allocation10 + $0x10] sm:$0xf0] }
 0x225   :  { %1579 = vmatmul.bf16.gmra.mxu3 %v1318_v27  ;;  %1633 = vmatmul.bf16.gmra.mxu2 %v1318_v27  ;;  %v3887_v27 = vld [vmem:[#allocation10 + $0x144] sm:$0xf0] }
 0x226   :  { %v1248_v4 = vpop.f32.mrf.mxu2  ;;  %2052 = vmatpush.bf16.msrb.mxu3 %v3770_v15  ;;  %v3830_v15 = vor.u32 %v4495_v10, %v3827_v12  ;;  %v3738_v10 = vor.u32 %v4473_v1, %v3737_v30  ;;  %v3971_v30 = vld [vmem:[#allocation11 + $0x68] sm:$0xf0]  ;;  %v4017_v1 = vld [vmem:[#allocation11 + $0xc0] sm:$0xf] }
 0x227   :  { %v1249_v23 = vadd.f32 %v1248_v4, %v1231_v20  ;;  %v3890_v4 = vor.u32 %v4510_v17, %v3887_v27  ;;  %v3873_v20 = vld [vmem:[#allocation10 + $0x120] sm:$0xf] }
 0x229   :  { %v1259_v16 = vmax.f32 %v1249_v23, 0.0  ;;  %v3753_v23 = vld [vmem:[#allocation10 + $0x30] sm:$0xf]  ;;  %2068 = vmatpush.bf16.msra.mxu0 %v3890_v4 }
 0x22e   :  { %v1250_v24 = vpop.f32.mrf.mxu2 }
 0x22f   :  { %v1251_v25 = vadd.f32 %v1250_v24, %v1233_v22  ;;  %v4508_v22 = vld [vmem:[#allocation10 + $0x128] sm:$0xf0] }
 0x230   :  { %v3874_v24 = vor.u32 %v4508_v22, %v3873_v20  ;;  %v3797_v20 = vld [vmem:[#allocation10 + $0x80] sm:$0xf]  ;;  %v4488_v22 = vld [vmem:[#allocation10 + $0x88] sm:$0xf0] }
 0x231   :  { %v1262_v26 = vmax.f32 %v1251_v25, 0.0  ;;  %v4478_v25 = vld [vmem:[#allocation10 + $0x38] sm:$0xf0] }
 0x232   :  { %2033 = vmatpush.bf16.msrb.mxu2 %v3874_v24  ;;  %v3798_v24 = vor.u32 %v4488_v22, %v3797_v20  ;;  %v3845_v22 = vld [vmem:[#allocation10 + $0xe0] sm:$0xf] }
 0x233   :  { %v1317_v2 = vpack.c.bf16 %v1262_v26, %v1259_v16  ;;  %v4477_v16 = vld [vmem:[#allocation10 + $0x34] sm:$0xf]  ;;  %v3755_v26 = vld [vmem:[#allocation10 + $0x3c] sm:$0xf0] }
 0x235   :  { %1610 = vmatmul.bf16.vlgmr.msra.gmra.mxu1 %v1317_v2  ;;  %1646 = vmatmul.bf16.vlgmr.msra.gmra.mxu3 %v1316_v53  ;;  %v4487_v53 = vld [vmem:[#allocation10 + $0x80] sm:$0xf0] }
 0x236   :  { %1664 = vmatmul.bf16.vlgmr.msrb.gmra.mxu0 %v1317_v2  ;;  %v1253_v28 = vpop.f32.mrf.mxu2  ;;  %v3790_v50 = vor.u32 %v4487_v53, %v3789_v46  ;;  %v3754_v2 = vor.u32 %v4478_v25, %v3753_v23  ;;  %2034 = vmatpush.bf16.msrb.mxu2 %v3862_v36  ;;  %v4502_v46 = vld [vmem:[#allocation10 + $0xf8] sm:$0xf0]  ;;  %v3917_v23 = vld [vmem:[#allocation10 + $0x170] sm:$0xf] }
 0x237   :  { %v1254_v31 = vadd.f32 %v1253_v28, %v1236_v29  ;;  %v3758_v28 = vor.u32 %v4477_v16, %v3755_v26  ;;  %v4507_v29 = vld [vmem:[#allocation10 + $0x124] sm:$0xf]  ;;  %v3850_v53 = vor.u32 %v4502_v46, %v3849_v45  ;;  %v4518_v25 = vld [vmem:[#allocation10 + $0x178] sm:$0xf0]  ;;  %v3881_v46 = vld [vmem:[#allocation10 + $0x128] sm:$0xf] }
 0x238   :  { %2014 = vmatpush.bf16.msrb.mxu1 %v3790_v50  ;;  %v3731_v50 = vld [vmem:[#allocation10 + $0xc] sm:$0xf0]  ;;  %v3918_v16 = vor.u32 %v4518_v25, %v3917_v23  ;;  %v1314_v26 = vld [vmem:[%s5167_s8] sm:$0x3]  ;;  %v4500_v23 = vld [vmem:[#allocation10 + $0xe8] sm:$0xf0] }
 0x239   :  { %v1265_v33 = vmax.f32 %v1254_v31, 0.0  ;;  %v3875_v31 = vld [vmem:[#allocation10 + $0x12c] sm:$0xf0]  ;;  %2053 = vmatpush.bf16.msrb.mxu3 %v3758_v28  ;;  %v3734_v52 = vor.u32 %v4471_v49, %v3731_v50  ;;  %v4485_v28 = vld [vmem:[#allocation10 + $0x70] sm:$0xf0]  ;;  %v1322_v7 = vperm.slane %v1314_v26, 0  ;;  %v3762_v49 = vor.u32 %v4479_v42, %v3761_v41 }
 0x23a   :  { %2035 = vmatpush.bf16.msrb.mxu2 %v3850_v53  ;;  %v3882_v50 = vor.u32 %v4509_v47, %v3881_v46  ;;  %v3846_v25 = vor.u32 %v4500_v23, %v3845_v22  ;;  %v4550_v46 = vld [vmem:[#allocation11 + $0xf4] sm:$0xf0]  ;;  %v4033_v47 = vld [vmem:[#allocation11 + $0xe0] sm:$0xf]  ;;  %v3955_v22 = vld [vmem:[#allocation11 + $0x48] sm:$0xf0] }
 0x23b   :  { %v1320_v34 = vpack.c.bf16 %v1265_v33, %v1265_v33 }
 0x23c   :  { %2015 = vmatpush.bf16.msrb.mxu1 %v3778_v62  ;;  %v4498_v62 = vld [vmem:[#allocation10 + $0xdc] sm:$0xf] }
 0x23d   :  { %2054 = vmatpush.bf16.msrb.mxu3 %v3746_v40  ;;  %v3842_v3 = vor.u32 %v4498_v62, %v3839_v0  ;;  %v4512_v40 = vld [vmem:[#allocation10 + $0x148] sm:$0xf0]  ;;  %v4506_v0 = vld [vmem:[#allocation10 + $0x118] sm:$0xf0] }
 0x23e   :  { %v1255_v32 = vpop.f32.mrf.mxu2  ;;  %2036 = vmatpush.bf16.msrb.mxu2 %v3838_v63  ;;  %v3894_v45 = vor.u32 %v4512_v40, %v3893_v38 }
 0x23f   :  { %v3878_v32 = vor.u32 %v4507_v29, %v3875_v31  ;;  %v3905_v29 = vld [vmem:[#allocation10 + $0x158] sm:$0xf] }
 0x241   :  { %2069 = vmatpush.bf16.msra.mxu0 %v3878_v32  ;;  %2055 = vmatpush.bf16.msrb.mxu3 %v3734_v52  ;;  %v4515_v32 = vld [vmem:[#allocation10 + $0x160] sm:$0xf0]  ;;  %v1323_v52 = vperm.slane %v1314_v26, 1  ;;  %v4497_v26 = vld [vmem:[#allocation10 + $0xd0] sm:$0xf0] }
 0x242   :  { %v3906_v58 = vor.u32 %v4515_v32, %v3905_v29 }
 0x245   :  { %1615 = vmatmul.bf16.gmra.mxu1 %v1320_v34  ;;  %1651 = vmatmul.bf16.gmra.mxu3 %v1319_v14  ;;  %v3766_v14 = vor.u32 %v4481_v11, %v3765_v9  ;;  %v4496_v9 = vld [vmem:[#allocation10 + $0xc8] sm:$0xf0] }
 0x246   :  { %1669 = vmatmul.bf16.gmra.mxu0 %v1320_v34  ;;  %v3826_v11 = vor.u32 %v4496_v9, %v3825_v8 }
 0x247   :  { %2016 = vmatpush.bf16.msrb.mxu1 %v3766_v14  ;;  %2070 = vmatpush.bf16.msra.mxu0 %v3866_v43  ;;  %v4491_v14 = vld [vmem:[#allocation10 + $0xa0] sm:$0xf0] }
 0x248   :  { %v3810_v17 = vor.u32 %v4491_v14, %v3809_v13  ;;  %2037 = vmatpush.bf16.msrb.mxu2 %v3826_v11 }
 0x24b   :  { %2017 = vmatpush.bf16.msrb.mxu1 %v3754_v2  ;;  %2071 = vmatpush.bf16.msra.mxu0 %v3854_v57  ;;  %v3785_v2 = vld [vmem:[#allocation10 + $0x68] sm:$0xf]  ;;  %v3749_v57 = vld [vmem:[#allocation10 + $0x20] sm:$0xf] }
 0x24c   :  { %2102 = vmatpush.bf16.msra.mxu2 %v3918_v16  ;;  %v3786_v31 = vor.u32 %v4485_v28, %v3785_v2  ;;  %v3833_v16 = vld [vmem:[#allocation10 + $0xc8] sm:$0xf] }
 0x24f   :  { %2018 = vmatpush.bf16.msrb.mxu1 %v3742_v39  ;;  %2072 = vmatpush.bf16.msra.mxu0 %v3842_v3  ;;  %v3774_v39 = vor.u32 %v4482_v18, %v3773_v37 }
 0x250   :  { %2103 = vmatpush.bf16.msra.mxu2 %v3906_v58 }
 0x253   :  { %2019 = vmatpush.bf16.msrb.mxu1 %v3730_v51  ;;  %2073 = vmatpush.bf16.msra.mxu0 %v3830_v15 }
 0x254   :  { %2104 = vmatpush.bf16.msra.mxu2 %v3894_v45 }
 0x257   :  { %2084 = vmatpush.bf16.msra.mxu1 %v3822_v5  ;;  %v3870_v5 = vor.u32 %v4506_v0, %v3869_v54 }
 0x258   :  { %2105 = vmatpush.bf16.msra.mxu2 %v3882_v50 }
 0x25b   :  { %2085 = vmatpush.bf16.msra.mxu1 %v3810_v17 }
 0x25c   :  { %2106 = vmatpush.bf16.msra.mxu2 %v3870_v5 }
 0x25f   :  { %2086 = vmatpush.bf16.msra.mxu1 %v3798_v24 }
 0x263   :  { %2087 = vmatpush.bf16.msra.mxu1 %v3786_v31 }
 0x267   :  { %2088 = vmatpush.bf16.msra.mxu1 %v3774_v39 }
 0x26b   :  { %2089 = vmatpush.bf16.msra.mxu1 %v3762_v49  ;;  %v4534_v49 = vld [vmem:[#allocation11 + $0x74] sm:$0xf0] }
 0x28c   :  { %v5028_v61 = vpop.f32.mrf.mxu0 }
 0x294   :  { %v5030_v19 = vpop.f32.mrf.mxu0 }
 0x298   :  { %v5032_v33 = vpop.f32.mrf.mxu3  ;;  %v5034_v34 = vpop.f32.mrf.mxu2 }
 0x299   :  { %v1576_v53 = vadd.f32 %v5032_v33, %v1322_v7  ;;  %v3750_v33 = vor.u32 %v4476_v60, %v3749_v57  ;;  %v1630_v8 = vadd.f32 %v5034_v34, %v1323_v52  ;;  %v4025_v57 = vld [vmem:[#allocation11 + $0xd0] sm:$0xf]  ;;  %v4546_v60 = vld [vmem:[#allocation11 + $0xd4] sm:$0xf0] }
 0x29a   :  { %v4026_v54 = vor.u32 %v4546_v60, %v4025_v57  ;;  %v4566_v57 = vld [vmem:[#allocation11 + $0x174] sm:$0xf0]  ;;  %v4565_v60 = vld [vmem:[#allocation11 + $0x174] sm:$0xf] }
 0x29b   :  { %v1594_v55 = vadd.f32 %v5028_v61, %v1576_v53  ;;  %2090 = vmatpush.bf16.msra.mxu1 %v3750_v33  ;;  %v4531_v33 = vld [vmem:[#allocation11 + $0x64] sm:$0xf] }
 0x29c   :  { %v5036_v44 = vpop.f32.mrf.mxu0  ;;  %v3974_v5 = vor.u32 %v4531_v33, %v3971_v30  ;;  %v4035_v30 = vld [vmem:[#allocation11 + $0xe8] sm:$0xf0] }
 0x29f   :  { %2091 = vmatpush.bf16.msra.mxu1 %v3738_v10  ;;  %v3963_v10 = vld [vmem:[#allocation11 + $0x58] sm:$0xf0] }
 0x2a0   :  { %v5038_v21 = vpop.f32.mrf.mxu3  ;;  %v5040_v59 = vpop.f32.mrf.mxu2 }
 0x2a1   :  { %v1578_v51 = vadd.f32 %v5038_v21, %v1322_v7  ;;  %v4503_v21 = vld [vmem:[#allocation10 + $0x100] sm:$0xf0] }
 0x2a3   :  { %v1596_v63 = vadd.f32 %v5030_v19, %v1578_v51  ;;  %v1632_v19 = vadd.f32 %v5040_v59, %v1323_v52  ;;  %v3834_v59 = vor.u32 %v4497_v26, %v3833_v16  ;;  %v4533_v51 = vld [vmem:[#allocation11 + $0x74] sm:$0xf]  ;;  %v3945_v16 = vld [vmem:[#allocation11 + $0x30] sm:$0xf]  ;;  %v4526_v26 = vld [vmem:[#allocation11 + $0x34] sm:$0xf0] }
 0x2a4   :  { %v1600_v6 = vpop.f32.mrf.mxu0 }
 0x2a5   :  { %v3857_v6 = vld [vmem:[#allocation10 + $0xf8] sm:$0xf] }
 0x2a6   :  { %v3858_v11 = vor.u32 %v4503_v21, %v3857_v6  ;;  %v3961_v21 = vld [vmem:[#allocation11 + $0x50] sm:$0xf] }
 0x2a8   :  { %v5042_v27 = vpop.f32.mrf.mxu3  ;;  %v5044_v4 = vpop.f32.mrf.mxu2  ;;  %2107 = vmatpush.bf16.msra.mxu2 %v3858_v11 }
 0x2a9   :  { %v1581_v17 = vadd.f32 %v5042_v27, %v1322_v7 }
 0x2ab   :  { %v1599_v27 = vadd.f32 %v5036_v44, %v1581_v17  ;;  %v4041_v44 = vld [vmem:[#allocation11 + $0xf0] sm:$0xf]  ;;  %v4527_v17 = vld [vmem:[#allocation11 + $0x44] sm:$0xf] }
 0x2ac   :  { %2108 = vmatpush.bf16.msra.mxu2 %v3846_v25  ;;  %v4042_v53 = vor.u32 %v4550_v46, %v4041_v44  ;;  %v3958_v23 = vor.u32 %v4527_v17, %v3955_v22  ;;  %v3931_v44 = vld [vmem:[#allocation11 + $0x18] sm:$0xf0] }
 0x2ad   :  { %v5063_v17 = vld [vmem:[%s5169_s10] sm:$0x7] }
 0x2ae   :  { %2447 = vmatpush.bf16.msrb.mxu0 %v4042_v53  ;;  %v4520_v53 = vld [vmem:[#allocation11 + $0x4] sm:$0xf0] }
 0x2b0   :  { %v1582_v35 = vpop.f32.mrf.mxu3  ;;  %v1636_v36 = vpop.f32.mrf.mxu2  ;;  %2109 = vmatpush.bf16.msra.mxu2 %v3834_v59 }
 0x2b1   :  { %v1635_v36 = vadd.f32 %v5044_v4, %v1323_v52  ;;  %v4548_v4 = vld [vmem:[#allocation11 + $0xe4] sm:$0xf0]  ;;  %v3979_v52 = vld [vmem:[#allocation11 + $0x78] sm:$0xf0] }
 0x2b2   :  { %v1611_v43 = vpop.f32.mrf.mxu1 }
 0x2b3   :  { %v1665_v48 = vpop.f32.mrf.mxu0  ;;  %v1612_v62 = vadd.f32 %v1611_v43, %v1594_v55  ;;  %v4034_v55 = vor.u32 %v4548_v4, %v4033_v47  ;;  %v3921_v47 = vld [vmem:[#allocation11] sm:$0xf]  ;;  %v4519_v4 = vld [vmem:[#allocation11 + $0x4] sm:$0xf] }
 0x2b5   :  { %v1674_v12 = vmax.f32 %v1612_v62, 0.0  ;;  %2448 = vmatpush.bf16.msrb.mxu0 %v4034_v55  ;;  %v3969_v62 = vld [vmem:[#allocation11 + $0x60] sm:$0xf]  ;;  %v4105_v55 = vld [vmem:[#allocation11 + $0x170] sm:$0xf] }
 0x2b8   :  { %v1647_v56 = vpop.f32.mrf.mxu3 }
 0x2b9   :  { %v1648_v13 = vadd.f32 %v1647_v56, %v1630_v8  ;;  %v3982_v56 = vor.u32 %v4533_v51, %v3979_v52  ;;  %2449 = vmatpush.bf16.msrb.mxu0 %v4026_v54  ;;  %v4530_v8 = vld [vmem:[#allocation11 + $0x54] sm:$0xf0]  ;;  %v4549_v51 = vld [vmem:[#allocation11 + $0xf4] sm:$0xf]  ;;  %v4043_v52 = vld [vmem:[#allocation11 + $0xf8] sm:$0xf0] }
 0x2ba   :  { %v1613_v3 = vpop.f32.mrf.mxu1  ;;  %v4107_v54 = vld [vmem:[#allocation11 + $0x178] sm:$0xf0] }
 0x2bb   :  { %v1614_v61 = vadd.f32 %v1613_v3, %v1596_v63  ;;  %v1667_v9 = vpop.f32.mrf.mxu0  ;;  %v1666_v34 = vadd.f32 %v1665_v48, %v1648_v13  ;;  %v3977_v48 = vld [vmem:[#allocation11 + $0x70] sm:$0xf]  ;;  %v4532_v63 = vld [vmem:[#allocation11 + $0x64] sm:$0xf0]  ;;  %v4542_v13 = vld [vmem:[#allocation11 + $0xb4] sm:$0xf0] }
 0x2bc   :  { %v3978_v50 = vor.u32 %v4534_v49, %v3977_v48  ;;  %v3970_v0 = vor.u32 %v4532_v63, %v3969_v62  ;;  %v4544_v3 = vld [vmem:[#allocation11 + $0xc4] sm:$0xf0]  ;;  %v3922_v48 = vor.u32 %v4520_v53, %v3921_v47  ;;  %v3923_v49 = vld [vmem:[#allocation11 + $0x8] sm:$0xf0]  ;;  %v4106_v62 = vor.u32 %v4566_v57, %v4105_v55  ;;  %v4539_v53 = vld [vmem:[#allocation11 + $0xa4] sm:$0xf] }
 0x2bd   :  { %v1676_v14 = vmax.f32 %v1614_v61, 0.0  ;;  %v1675_v31 = vmax.f32 %v1666_v34, 0.0  ;;  %v4018_v6 = vor.u32 %v4544_v3, %v4017_v1  ;;  %v3962_v61 = vor.u32 %v4530_v8, %v3961_v21  ;;  %v4001_v34 = vld [vmem:[#allocation11 + $0xa0] sm:$0xf]  ;;  %v4099_v8 = vld [vmem:[#allocation11 + $0x168] sm:$0xf0] }
 0x2be   :  { %2429 = vmatpush.bf16.msra.mxu3 %v3978_v50  ;;  %v3926_v50 = vor.u32 %v4519_v4, %v3923_v49  ;;  %v4110_v63 = vor.u32 %v4565_v60, %v4107_v54  ;;  %v4097_v3 = vld [vmem:[#allocation11 + $0x160] sm:$0xf]  ;;  %v4003_v4 = vld [vmem:[#allocation11 + $0xa8] sm:$0xf0]  ;;  %v4537_v60 = vld [vmem:[#allocation11 + $0x94] sm:$0xf] }
 0x2bf   :  { %v1745_v15 = vpack.c.bf16 %v1676_v14, %v1674_v12  ;;  %2450 = vmatpush.bf16.msrb.mxu0 %v4018_v6  ;;  %v4009_v12 = vld [vmem:[#allocation11 + $0xb0] sm:$0xf]  ;;  %v4563_v6 = vld [vmem:[#allocation11 + $0x164] sm:$0xf]  ;;  %v4067_v57 = vld [vmem:[#allocation11 + $0x128] sm:$0xf0] }
 0x2c0   :  { %v1649_v20 = vpop.f32.mrf.mxu3  ;;  %v4010_v14 = vor.u32 %v4542_v13, %v4009_v12  ;;  %v4089_v12 = vld [vmem:[#allocation11 + $0x150] sm:$0xf]  ;;  %v4562_v13 = vld [vmem:[#allocation11 + $0x154] sm:$0xf0]  ;;  %v3995_v54 = vld [vmem:[#allocation11 + $0x98] sm:$0xf0] }
 0x2c1   :  { %v1650_v24 = vadd.f32 %v1649_v20, %v1632_v19  ;;  %2020 = vmatmul.bf16.vlgmr.msrb.gmra.mxu1 %v1745_v15  ;;  %2056 = vmatmul.bf16.vlgmr.msrb.gmra.mxu3 %v1745_v15  ;;  %v3953_v19 = vld [vmem:[#allocation11 + $0x40] sm:$0xf] }
 0x2c2   :  { %v1616_v2 = vpop.f32.mrf.mxu1  ;;  %2430 = vmatpush.bf16.msra.mxu3 %v3970_v0  ;;  %2465 = vmatpush.bf16.msrb.mxu1 %v4106_v62  ;;  %v4547_v0 = vld [vmem:[#allocation11 + $0xe4] sm:$0xf] }
 0x2c3   :  { %v1668_v28 = vadd.f32 %v1667_v9, %v1650_v24  ;;  %v1670_v29 = vpop.f32.mrf.mxu0  ;;  %v1617_v7 = vadd.f32 %v1616_v2, %v1599_v27  ;;  %v4529_v9 = vld [vmem:[#allocation11 + $0x54] sm:$0xf]  ;;  %2451 = vmatpush.bf16.msrb.mxu0 %v4010_v14  ;;  %v4540_v24 = vld [vmem:[#allocation11 + $0xa4] sm:$0xf0]  ;;  %v3946_v2 = vor.u32 %v4526_v26, %v3945_v16  ;;  %v4038_v1 = vor.u32 %v4547_v0, %v4035_v30  ;;  %v4019_v16 = vld [vmem:[#allocation11 + $0xc8] sm:$0xf0] }
 0x2c4   :  { %v3966_v11 = vor.u32 %v4529_v9, %v3963_v10  ;;  %v4002_v25 = vor.u32 %v4540_v24, %v4001_v34  ;;  %v4545_v9 = vld [vmem:[#allocation11 + $0xd4] sm:$0xf]  ;;  %v4027_v10 = vld [vmem:[#allocation11 + $0xd8] sm:$0xf0]  ;;  %v4081_v26 = vld [vmem:[#allocation11 + $0x140] sm:$0xf]  ;;  %v3998_v30 = vor.u32 %v4537_v60, %v3995_v54 }
 0x2c5   :  { %v1677_v32 = vmax.f32 %v1668_v28, 0.0  ;;  %v1678_v18 = vmax.f32 %v1617_v7, 0.0  ;;  %v4525_v28 = vld [vmem:[#allocation11 + $0x34] sm:$0xf]  ;;  %v4524_v7 = vld [vmem:[#allocation11 + $0x24] sm:$0xf0] }
 0x2c6   :  { %2431 = vmatpush.bf16.msra.mxu3 %v3962_v61  ;;  %v4102_v61 = vor.u32 %v4563_v6, %v4099_v8  ;;  %v4561_v14 = vld [vmem:[#allocation11 + $0x154] sm:$0xf] }
 0x2c7   :  { %v1746_v58 = vpack.c.bf16 %v1677_v32, %v1675_v31  ;;  %v1747_v40 = vpack.c.bf16 %v1678_v18, %v1678_v18  ;;  %2452 = vmatpush.bf16.msrb.mxu0 %v4002_v25  ;;  %v3993_v31 = vld [vmem:[#allocation11 + $0x90] sm:$0xf]  ;;  %v4538_v32 = vld [vmem:[#allocation11 + $0x94] sm:$0xf0]  ;;  %v4543_v25 = vld [vmem:[#allocation11 + $0xc4] sm:$0xf] }
 0x2c8   :  { %v1652_v35 = vpop.f32.mrf.mxu3  ;;  %v3994_v27 = vor.u32 %v4538_v32, %v3993_v31  ;;  %v4589_v54 = vld [vmem:[#allocation13 + $0xb0] sm:$0xf0] }
 0x2c9   :  { %2038 = vmatmul.bf16.vlgmr.msrb.gmra.mxu2 %v1746_v58  ;;  %2074 = vmatmul.bf16.vlgmr.msra.gmra.mxu0 %v1746_v58  ;;  %v1653_v38 = vadd.f32 %v1652_v35, %v1635_v36  ;;  %v4523_v35 = vld [vmem:[#allocation11 + $0x24] sm:$0xf] }
 0x2ca   :  { %v1618_v37 = vpop.f32.mrf.mxu1  ;;  %2483 = vmatpush.bf16.msrb.mxu2 %v3982_v56  ;;  %v4046_v56 = vor.u32 %v4549_v51, %v4043_v52  ;;  %v4556_v51 = vld [vmem:[#allocation11 + $0x124] sm:$0xf0]  ;;  %v4555_v52 = vld [vmem:[#allocation11 + $0x124] sm:$0xf] }
 0x2cb   :  { %v1672_v39 = vpop.f32.mrf.mxu0  ;;  %v1671_v41 = vadd.f32 %v1670_v29, %v1653_v38  ;;  %v3947_v29 = vld [vmem:[#allocation11 + $0x38] sm:$0xf0]  ;;  %2453 = vmatpush.bf16.msrb.mxu0 %v3994_v27  ;;  %v3939_v37 = vld [vmem:[#allocation11 + $0x28] sm:$0xf0]  ;;  %v3985_v38 = vld [vmem:[#allocation11 + $0x80] sm:$0xf]  ;;  %v4070_v0 = vor.u32 %v4555_v52, %v4067_v57 }
 0x2cc   :  { %v3950_v59 = vor.u32 %v4525_v28, %v3947_v29  ;;  %v3942_v18 = vor.u32 %v4523_v35, %v3939_v37  ;;  %v4536_v39 = vld [vmem:[#allocation11 + $0x84] sm:$0xf0]  ;;  %v4559_v29 = vld [vmem:[#allocation11 + $0x144] sm:$0xf]  ;;  %v4073_v35 = vld [vmem:[#allocation11 + $0x130] sm:$0xf] }
 0x2cd   :  { %v1679_v43 = vmax.f32 %v1671_v41, 0.0  ;;  %v3929_v41 = vld [vmem:[#allocation11 + $0x10] sm:$0xf]  ;;  %v4560_v28 = vld [vmem:[#allocation11 + $0x144] sm:$0xf0] }
 0x2ce   :  { %2484 = vmatpush.bf16.msrb.mxu2 %v3974_v5  ;;  %v4564_v5 = vld [vmem:[#allocation11 + $0x164] sm:$0xf0]  ;;  %v4082_v31 = vor.u32 %v4560_v28, %v4081_v26  ;;  %v4558_v37 = vld [vmem:[#allocation11 + $0x134] sm:$0xf0]  ;;  %v4551_v26 = vld [vmem:[#allocation11 + $0x104] sm:$0xf] }
 0x2cf   :  { %v1748_v45 = vpack.c.bf16 %v1679_v43, %v1679_v43  ;;  %v4521_v43 = vld [vmem:[#allocation11 + $0x14] sm:$0xf]  ;;  %v4098_v21 = vor.u32 %v4564_v5, %v4097_v3  ;;  %v4554_v3 = vld [vmem:[#allocation11 + $0x114] sm:$0xf0]  ;;  %v4051_v28 = vld [vmem:[#allocation11 + $0x108] sm:$0xf0] }
 0x2d0   :  { %v1654_v42 = vpop.f32.mrf.mxu3  ;;  %v3934_v46 = vor.u32 %v4521_v43, %v3931_v44  ;;  %v4553_v5 = vld [vmem:[#allocation11 + $0x114] sm:$0xf] }
 0x2d1   :  { %2025 = vmatmul.bf16.gmra.mxu1 %v1747_v40  ;;  %2061 = vmatmul.bf16.gmra.mxu3 %v1747_v40  ;;  %v4522_v42 = vld [vmem:[#allocation11 + $0x14] sm:$0xf0] }
 0x2d2   :  { %2485 = vmatpush.bf16.msrb.mxu2 %v3966_v11  ;;  %2466 = vmatpush.bf16.msrb.mxu1 %v4098_v21  ;;  %v4030_v11 = vor.u32 %v4545_v9, %v4027_v10 }
 0x2d6   :  { %2486 = vmatpush.bf16.msrb.mxu2 %v3958_v23  ;;  %v5066_v23 = vperm.slane %v5063_v17, 1 }
 0x2d9   :  { %2043 = vmatmul.bf16.gmra.mxu2 %v1748_v45  ;;  %2079 = vmatmul.bf16.gmra.mxu0 %v1748_v45 }
 0x2da   :  { %2487 = vmatpush.bf16.msrb.mxu2 %v3950_v59  ;;  %v4083_v59 = vld [vmem:[#allocation11 + $0x148] sm:$0xf0] }
 0x2db   :  { %v4086_v32 = vor.u32 %v4559_v29, %v4083_v59  ;;  %v4054_v59 = vor.u32 %v4551_v26, %v4051_v28 }
 0x2de   :  { %2488 = vmatpush.bf16.msrb.mxu2 %v3942_v18  ;;  %v4557_v18 = vld [vmem:[#allocation11 + $0x134] sm:$0xf] }
 0x2e1   :  { %2092 = vmatmul.bf16.vlgmr.msra.gmra.mxu1 %v1745_v15  ;;  %v4528_v15 = vld [vmem:[#allocation11 + $0x44] sm:$0xf0] }
 0x2e2   :  { %v3954_v20 = vor.u32 %v4528_v15, %v3953_v19  ;;  %2489 = vmatpush.bf16.msrb.mxu2 %v3934_v46  ;;  %v4090_v19 = vor.u32 %v4562_v13, %v4089_v12  ;;  %v4091_v15 = vld [vmem:[#allocation11 + $0x158] sm:$0xf0] }
 0x2e3   :  { %v4094_v22 = vor.u32 %v4561_v14, %v4091_v15  ;;  %v3987_v15 = vld [vmem:[#allocation11 + $0x88] sm:$0xf0] }
 0x2e4   :  { %2432 = vmatpush.bf16.msra.mxu3 %v3954_v20  ;;  %2467 = vmatpush.bf16.msrb.mxu1 %v4090_v19  ;;  %v4535_v19 = vld [vmem:[#allocation11 + $0x84] sm:$0xf] }
 0x2e6   :  { %2490 = vmatpush.bf16.msrb.mxu2 %v3926_v50  ;;  %v4006_v50 = vor.u32 %v4539_v53, %v4003_v4 }
 0x2e8   :  { %2433 = vmatpush.bf16.msra.mxu3 %v3946_v2  ;;  %v4022_v2 = vor.u32 %v4543_v25, %v4019_v16  ;;  %2468 = vmatpush.bf16.msrb.mxu1 %v4082_v31  ;;  %v3990_v25 = vor.u32 %v4535_v19, %v3987_v15  ;;  %v4552_v16 = vld [vmem:[#allocation11 + $0x104] sm:$0xf0]  ;;  %v4612_v15 = vld [vmem:[#allocation13 + $0x16c] sm:$0xf] }
 0x2e9   :  { %2110 = vmatmul.bf16.vlgmr.msra.gmra.mxu2 %v1746_v58  ;;  %v3937_v58 = vld [vmem:[#allocation11 + $0x20] sm:$0xf] }
 0x2ea   :  { %v3938_v36 = vor.u32 %v4524_v7, %v3937_v58  ;;  %v4541_v58 = vld [vmem:[#allocation11 + $0xb4] sm:$0xf]  ;;  %v4011_v7 = vld [vmem:[#allocation11 + $0xb8] sm:$0xf0] }
 0x2ec   :  { %2434 = vmatpush.bf16.msra.mxu3 %v3938_v36  ;;  %v4014_v36 = vor.u32 %v4541_v58, %v4011_v7 }
 0x2f1   :  { %2097 = vmatmul.bf16.gmra.mxu1 %v1747_v40  ;;  %v3986_v40 = vor.u32 %v4536_v39, %v3985_v38  ;;  %v4075_v38 = vld [vmem:[#allocation11 + $0x138] sm:$0xf0]  ;;  %v5070_v39 = vperm.slane %v5063_v17, 0 }
 0x2f2   :  { %v4078_v43 = vor.u32 %v4557_v18, %v4075_v38 }
 0x2f3   :  { %2454 = vmatpush.bf16.msrb.mxu0 %v3986_v40 }
 0x2f7   :  { %2519 = vmatpush.bf16.msra.mxu0 %v4110_v63 }
 0x2f9   :  { %2115 = vmatmul.bf16.gmra.mxu2 %v1748_v45  ;;  %v3930_v45 = vor.u32 %v4522_v42, %v3929_v41  ;;  %v4074_v42 = vor.u32 %v4558_v37, %v4073_v35 }
 0x2fb   :  { %2435 = vmatpush.bf16.msra.mxu3 %v3930_v45  ;;  %2520 = vmatpush.bf16.msra.mxu0 %v4102_v61 }
 0x2fc   :  { %2469 = vmatpush.bf16.msrb.mxu1 %v4074_v42 }
 0x2ff   :  { %2436 = vmatpush.bf16.msra.mxu3 %v3922_v48  ;;  %2521 = vmatpush.bf16.msra.mxu0 %v4094_v22  ;;  %v4065_v48 = vld [vmem:[#allocation11 + $0x120] sm:$0xf] }
 0x303   :  { %2501 = vmatpush.bf16.msrb.mxu3 %v4046_v56  ;;  %2522 = vmatpush.bf16.msra.mxu0 %v4086_v32  ;;  %v4066_v56 = vor.u32 %v4556_v51, %v4065_v48 }
 0x305   :  { %2470 = vmatpush.bf16.msrb.mxu1 %v4066_v56 }
 0x307   :  { %2502 = vmatpush.bf16.msrb.mxu3 %v4038_v1  ;;  %2523 = vmatpush.bf16.msra.mxu0 %v4078_v43  ;;  %v4057_v1 = vld [vmem:[#allocation11 + $0x110] sm:$0xf]  ;;  %v1752_v43 = vperm.slane %v5063_v17, 2  ;;  %v4197_v17 = vld [vmem:[#allocation13 + $0xa8] sm:$0xf] }
 0x308   :  { %v4058_v61 = vor.u32 %v4554_v3, %v4057_v1  ;;  %v4185_v1 = vld [vmem:[#allocation13 + $0x90] sm:$0xf]  ;;  %v4586_v3 = vld [vmem:[#allocation13 + $0x98] sm:$0xf0] }
 0x30a   :  { %2471 = vmatpush.bf16.msrb.mxu1 %v4058_v61  ;;  %v4293_v61 = vld [vmem:[#allocation13 + $0x168] sm:$0xf] }
 0x30b   :  { %2503 = vmatpush.bf16.msrb.mxu3 %v4030_v11  ;;  %2524 = vmatpush.bf16.msra.mxu0 %v4070_v0  ;;  %v4199_v0 = vld [vmem:[#allocation13 + $0xb4] sm:$0xf0] }
 0x30f   :  { %2504 = vmatpush.bf16.msrb.mxu3 %v4022_v2 }
 0x313   :  { %2505 = vmatpush.bf16.msrb.mxu3 %v4014_v36 }
 0x317   :  { %2506 = vmatpush.bf16.msrb.mxu3 %v4006_v50 }
 0x31b   :  { %2507 = vmatpush.bf16.msrb.mxu3 %v3998_v30 }
 0x31f   :  { %2508 = vmatpush.bf16.msrb.mxu3 %v3990_v25  ;;  %v4161_v25 = vld [vmem:[#allocation13 + $0x60] sm:$0xf] }
 0x33e   :  { %v5058_v33 = vpop.f32.mrf.mxu1 }
 0x33f   :  { %v2022_v55 = vadd.f32 %v5058_v33, %v5070_v39  ;;  %v4059_v33 = vld [vmem:[#allocation11 + $0x118] sm:$0xf0] }
 0x340   :  { %v4062_v11 = vor.u32 %v4553_v5, %v4059_v33  ;;  %v4585_v5 = vld [vmem:[#allocation13 + $0x94] sm:$0xf] }
 0x341   :  { %v4613_v33 = vld [vmem:[#allocation13 + $0x170] sm:$0xf0] }
 0x342   :  { %2525 = vmatpush.bf16.msra.mxu0 %v4062_v11  ;;  %v4583_v11 = vld [vmem:[#allocation13 + $0x80] sm:$0xf0] }
 0x344   :  { %v2057_v20 = vpop.f32.mrf.mxu3 }
 0x345   :  { %v2058_v27 = vadd.f32 %v2057_v20, %v5066_v23  ;;  %v4049_v20 = vld [vmem:[#allocation11 + $0x100] sm:$0xf] }
 0x346   :  { %v2023_v34 = vpop.f32.mrf.mxu1  ;;  %v2075_v24 = vpop.f32.mrf.mxu0  ;;  %v4050_v2 = vor.u32 %v4552_v16, %v4049_v20  ;;  %2526 = vmatpush.bf16.msra.mxu0 %v4054_v59  ;;  %v4295_v20 = vld [vmem:[#allocation13 + $0x174] sm:$0xf0]  ;;  %v4580_v16 = vld [vmem:[#allocation13 + $0x68] sm:$0xf0]  ;;  %v4163_v59 = vld [vmem:[#allocation13 + $0x6c] sm:$0xf0] }
 0x347   :  { %v2076_v45 = vadd.f32 %v2075_v24, %v2058_v27  ;;  %v2024_v6 = vadd.f32 %v2023_v34, %v5070_v39  ;;  %v4162_v28 = vor.u32 %v4580_v16, %v4161_v25 }
 0x348   :  { %2472 = vmatpush.bf16.msrb.mxu1 %v4050_v2 }
 0x349   :  { %v2121_v62 = vmax.f32 %v2076_v45, 0.0 }
 0x34c   :  { %v2039_v40 = vpop.f32.mrf.mxu2  ;;  %v2059_v41 = vpop.f32.mrf.mxu3 }
 0x34d   :  { %v2060_v44 = vadd.f32 %v2059_v41, %v5066_v23  ;;  %v2040_v21 = vadd.f32 %v2039_v40, %v2022_v55 }
 0x34e   :  { %v5073_v46 = vpop.f32.mrf.mxu1  ;;  %v2077_v47 = vpop.f32.mrf.mxu0 }
 0x34f   :  { %v2078_v49 = vadd.f32 %v2077_v47, %v2060_v44  ;;  %v2120_v22 = vmax.f32 %v2040_v21, 0.0  ;;  %v4187_v21 = vld [vmem:[#allocation13 + $0x9c] sm:$0xf0] }
 0x351   :  { %v2124_v63 = vmax.f32 %v2078_v49, 0.0 }
 0x353   :  { %v2179_v8 = vpack.c.bf16 %v2124_v63, %v2121_v62  ;;  %v4588_v62 = vld [vmem:[#allocation13 + $0xac] sm:$0xf]  ;;  %v4198_v63 = vor.u32 %v4589_v54, %v4197_v17  ;;  %v4245_v17 = vld [vmem:[#allocation13 + $0x108] sm:$0xf]  ;;  %v4601_v54 = vld [vmem:[#allocation13 + $0x110] sm:$0xf0] }
 0x354   :  { %v2041_v9 = vpop.f32.mrf.mxu2  ;;  %v2062_v10 = vpop.f32.mrf.mxu3  ;;  %v4202_v30 = vor.u32 %v4588_v62, %v4199_v0  ;;  %v4125_v62 = vld [vmem:[#allocation13 + $0x18] sm:$0xf]  ;;  %v4571_v0 = vld [vmem:[#allocation13 + $0x20] sm:$0xf0] }
 0x355   :  { %v2042_v12 = vadd.f32 %v2041_v9, %v2024_v6  ;;  %2455 = vmatmul.bf16.vlgmr.msrb.gmra.mxu0 %v2179_v8  ;;  %v2063_v34 = vadd.f32 %v2062_v10, %v5066_v23  ;;  %v2027_v23 = vadd.f32 %v5073_v46, %v5070_v39  ;;  %2875 = vmatpush.bf16.msra.mxu1 %v4198_v63  ;;  %v4173_v9 = vld [vmem:[#allocation13 + $0x78] sm:$0xf] }
 0x356   :  { %v2028_v13 = vpop.f32.mrf.mxu1  ;;  %v2080_v14 = vpop.f32.mrf.mxu0  ;;  %v4186_v6 = vor.u32 %v4586_v3, %v4185_v1  ;;  %v4294_v10 = vor.u32 %v4613_v33, %v4293_v61  ;;  %v4246_v63 = vor.u32 %v4601_v54, %v4245_v17  ;;  %v4127_v1 = vld [vmem:[#allocation13 + $0x24] sm:$0xf0]  ;;  %v4126_v3 = vor.u32 %v4571_v0, %v4125_v62  ;;  %v4233_v33 = vld [vmem:[#allocation13 + $0xf0] sm:$0xf]  ;;  %v4581_v54 = vld [vmem:[#allocation13 + $0x70] sm:$0xf0] }
 0x357   :  { %v2123_v24 = vmax.f32 %v2042_v12, 0.0  ;;  %v2081_v31 = vadd.f32 %v2080_v14, %v2063_v34  ;;  %v4582_v12 = vld [vmem:[#allocation13 + $0x7c] sm:$0xf]  ;;  %v4175_v13 = vld [vmem:[#allocation13 + $0x84] sm:$0xf0]  ;;  %v4174_v14 = vor.u32 %v4583_v11, %v4173_v9 }
 0x358   :  { %v4178_v19 = vor.u32 %v4582_v12, %v4175_v13  ;;  %2893 = vmatpush.bf16.msra.mxu2 %v4294_v10  ;;  %v4610_v34 = vld [vmem:[#allocation13 + $0x158] sm:$0xf0]  ;;  %v4113_v10 = vld [vmem:[#allocation13] sm:$0xf]  ;;  %v4568_v12 = vld [vmem:[#allocation13 + $0x8] sm:$0xf0] }
 0x359   :  { %v2178_v29 = vpack.c.bf16 %v2123_v24, %v2120_v22  ;;  %v2127_v35 = vmax.f32 %v2081_v31, 0.0  ;;  %2876 = vmatpush.bf16.msra.mxu1 %v4186_v6  ;;  %v4281_v22 = vld [vmem:[#allocation13 + $0x150] sm:$0xf]  ;;  %v5082_v24 = vor.u32 %v4612_v15, %v4295_v20  ;;  %v4609_v31 = vld [vmem:[#allocation13 + $0x154] sm:$0xf] }
 0x35a   :  { %v4282_v2 = vor.u32 %v4610_v34, %v4281_v22  ;;  %v4600_v6 = vld [vmem:[#allocation13 + $0x10c] sm:$0xf]  ;;  %v4598_v9 = vld [vmem:[#allocation13 + $0xf8] sm:$0xf0]  ;;  %v4567_v13 = vld [vmem:[#allocation13 + $0x4] sm:$0xf] }
 0x35b   :  { %2437 = vmatmul.bf16.vlgmr.msra.gmra.mxu3 %v2178_v29  ;;  %2491 = vmatmul.bf16.vlgmr.msrb.gmra.mxu2 %v2178_v29  ;;  %v2182_v37 = vpack.c.bf16 %v2127_v35, %v2127_v35  ;;  %v4579_v29 = vld [vmem:[#allocation13 + $0x64] sm:$0xf]  ;;  %v4149_v35 = vld [vmem:[#allocation13 + $0x48] sm:$0xf]  ;;  %v4234_v11 = vor.u32 %v4598_v9, %v4233_v33  ;;  %v4597_v20 = vld [vmem:[#allocation13 + $0xf4] sm:$0xf] }
 0x35c   :  { %v2044_v32 = vpop.f32.mrf.mxu2  ;;  %v2064_v27 = vpop.f32.mrf.mxu3  ;;  %2911 = vmatpush.bf16.msra.mxu3 %v4202_v30  ;;  %2929 = vmatpush.bf16.msrb.mxu0 %v5082_v24  ;;  %v4570_v30 = vld [vmem:[#allocation13 + $0x1c] sm:$0xf]  ;;  %v4235_v22 = vld [vmem:[#allocation13 + $0xfc] sm:$0xf0]  ;;  %v4605_v33 = vld [vmem:[#allocation13 + $0x130] sm:$0xf0] }
 0x35d   :  { %v2045_v36 = vadd.f32 %v2044_v32, %v2027_v23  ;;  %2877 = vmatpush.bf16.msra.mxu1 %v4174_v14  ;;  %v4166_v32 = vor.u32 %v4579_v29, %v4163_v59  ;;  %v4283_v27 = vld [vmem:[#allocation13 + $0x15c] sm:$0xf0]  ;;  %2894 = vmatpush.bf16.msra.mxu2 %v4282_v2  ;;  %v4607_v23 = vld [vmem:[#allocation13 + $0x140] sm:$0xf0]  ;;  %v4115_v14 = vld [vmem:[#allocation13 + $0xc] sm:$0xf0]  ;;  %v5107_v34 = vor.u32 %v4597_v20, %v4235_v22 }
 0x35e   :  { %v2082_v58 = vpop.f32.mrf.mxu0  ;;  %v2093_v7 = vpop.f32.mrf.mxu1  ;;  %v4118_v15 = vor.u32 %v4567_v13, %v4115_v14  ;;  %v4221_v2 = vld [vmem:[#allocation13 + $0xd8] sm:$0xf]  ;;  %v4594_v29 = vld [vmem:[#allocation13 + $0xdc] sm:$0xf] }
 0x35f   :  { %v2126_v38 = vmax.f32 %v2045_v36, 0.0  ;;  %v2094_v44 = vadd.f32 %v2093_v7, %v1752_v43  ;;  %v5087_v58 = vor.u32 %v4609_v31, %v4283_v27  ;;  %v4269_v7 = vld [vmem:[#allocation13 + $0x138] sm:$0xf]  ;;  %v4223_v31 = vld [vmem:[#allocation13 + $0xe4] sm:$0xf0] }
 0x360   :  { %v4270_v36 = vor.u32 %v4607_v23, %v4269_v7  ;;  %v4590_v27 = vld [vmem:[#allocation13 + $0xb8] sm:$0xf0]  ;;  %v5115_v7 = vor.u32 %v4594_v29, %v4223_v31  ;;  %v4133_v29 = vld [vmem:[#allocation13 + $0x20] sm:$0xf] }
 0x361   :  { %v2181_v41 = vpack.c.bf16 %v2126_v38, %v2126_v38  ;;  %2878 = vmatpush.bf16.msra.mxu1 %v4162_v28  ;;  %2930 = vmatpush.bf16.msrb.mxu0 %v5087_v58  ;;  %v4151_v38 = vld [vmem:[#allocation13 + $0x54] sm:$0xf0]  ;;  %v4595_v28 = vld [vmem:[#allocation13 + $0xe0] sm:$0xf0] }
 0x362   :  { %2895 = vmatpush.bf16.msra.mxu2 %v4270_v36  ;;  %v4222_v59 = vor.u32 %v4595_v28, %v4221_v2  ;;  %v4209_v36 = vld [vmem:[#allocation13 + $0xc0] sm:$0xf]  ;;  %v4253_v2 = vld [vmem:[#allocation13 + $0x110] sm:$0xf]  ;;  %v4602_v28 = vld [vmem:[#allocation13 + $0x118] sm:$0xf0] }
 0x363   :  { %v4254_v31 = vor.u32 %v4602_v28, %v4253_v2 }
 0x364   :  { %v2046_v18 = vpop.f32.mrf.mxu2 }
 0x365   :  { %2460 = vmatmul.bf16.gmra.mxu0 %v2182_v37  ;;  %v4576_v18 = vld [vmem:[#allocation13 + $0x4c] sm:$0xf] }
 0x366   :  { %v2095_v40 = vpop.f32.mrf.mxu1 }
 0x367   :  { %v2096_v47 = vadd.f32 %v2095_v40, %v1752_v43 }
 0x36b   :  { %2442 = vmatmul.bf16.gmra.mxu3 %v2181_v41  ;;  %2496 = vmatmul.bf16.gmra.mxu2 %v2181_v41  ;;  %v4154_v41 = vor.u32 %v4576_v18, %v4151_v38  ;;  %v4591_v18 = vld [vmem:[#allocation13 + $0xc4] sm:$0xf] }
 0x36c   :  { %v2111_v42 = vpop.f32.mrf.mxu2 }
 0x36d   :  { %v2112_v53 = vadd.f32 %v2111_v42, %v2094_v44  ;;  %v4606_v42 = vld [vmem:[#allocation13 + $0x13c] sm:$0xf] }
 0x36e   :  { %v2098_v45 = vpop.f32.mrf.mxu1 }
 0x36f   :  { %v2122_v46 = vmax.f32 %v2112_v53, 0.0  ;;  %v2099_v52 = vadd.f32 %v2098_v45, %v1752_v43  ;;  %v4271_v43 = vld [vmem:[#allocation13 + $0x144] sm:$0xf0]  ;;  %v4604_v53 = vld [vmem:[#allocation13 + $0x128] sm:$0xf0] }
 0x370   :  { %v5090_v45 = vor.u32 %v4606_v42, %v4271_v43 }
 0x372   :  { %2931 = vmatpush.bf16.msrb.mxu0 %v5090_v45 }
 0x374   :  { %v2113_v4 = vpop.f32.mrf.mxu2 }
 0x375   :  { %v2114_v48 = vadd.f32 %v2113_v4, %v2096_v47  ;;  %v4257_v47 = vld [vmem:[#allocation13 + $0x120] sm:$0xf]  ;;  %v4137_v4 = vld [vmem:[#allocation13 + $0x30] sm:$0xf] }
 0x376   :  { %v2100_v39 = vpop.f32.mrf.mxu1 }
 0x377   :  { %v2125_v49 = vmax.f32 %v2114_v48, 0.0  ;;  %v4258_v48 = vor.u32 %v4604_v53, %v4257_v47  ;;  %v4574_v39 = vld [vmem:[#allocation13 + $0x38] sm:$0xf0] }
 0x379   :  { %v2180_v50 = vpack.c.bf16 %v2125_v49, %v2122_v46  ;;  %v4573_v46 = vld [vmem:[#allocation13 + $0x34] sm:$0xf]  ;;  %v4139_v49 = vld [vmem:[#allocation13 + $0x3c] sm:$0xf0]  ;;  %2896 = vmatpush.bf16.msra.mxu2 %v4258_v48  ;;  %v4614_v48 = vld [vmem:[#allocation13 + $0x178] sm:$0xf0] }
 0x37b   :  { %2473 = vmatmul.bf16.vlgmr.msrb.gmra.mxu1 %v2180_v50  ;;  %2509 = vmatmul.bf16.vlgmr.msrb.gmra.mxu3 %v2179_v8  ;;  %v4190_v8 = vor.u32 %v4585_v5, %v4187_v21  ;;  %v4130_v5 = vor.u32 %v4570_v30, %v4127_v1  ;;  %v4247_v21 = vld [vmem:[#allocation13 + $0x114] sm:$0xf0]  ;;  %v4277_v30 = vld [vmem:[#allocation13 + $0x140] sm:$0xf]  ;;  %v4608_v1 = vld [vmem:[#allocation13 + $0x148] sm:$0xf0] }
 0x37c   :  { %2527 = vmatmul.bf16.vlgmr.msra.gmra.mxu0 %v2180_v50  ;;  %v2116_v51 = vpop.f32.mrf.mxu2  ;;  %v4138_v50 = vor.u32 %v4574_v39, %v4137_v4  ;;  %v4301_v4 = vld [vmem:[#allocation13 + $0x170] sm:$0xf]  ;;  %v4181_v39 = vld [vmem:[#allocation13 + $0x80] sm:$0xf] }
 0x37d   :  { %v2117_v55 = vadd.f32 %v2116_v51, %v2099_v52  ;;  %2912 = vmatpush.bf16.msra.mxu3 %v4190_v8  ;;  %v4142_v51 = vor.u32 %v4573_v46, %v4139_v49  ;;  %v4603_v52 = vld [vmem:[#allocation13 + $0x124] sm:$0xf]  ;;  %2897 = vmatpush.bf16.msra.mxu2 %v4246_v63  ;;  %v5102_v8 = vor.u32 %v4600_v6, %v4247_v21  ;;  %v4578_v6 = vld [vmem:[#allocation13 + $0x58] sm:$0xf0]  ;;  %v4265_v21 = vld [vmem:[#allocation13 + $0x128] sm:$0xf] }
 0x37e   :  { %v4302_v46 = vor.u32 %v4614_v48, %v4301_v4  ;;  %v4266_v14 = vor.u32 %v4605_v33, %v4265_v21 }
 0x37f   :  { %v2128_v57 = vmax.f32 %v2117_v55, 0.0  ;;  %v4259_v55 = vld [vmem:[#allocation13 + $0x12c] sm:$0xf0] }
 0x381   :  { %v2183_v60 = vpack.c.bf16 %v2128_v57, %v2128_v57  ;;  %2913 = vmatpush.bf16.msra.mxu3 %v4178_v19  ;;  %v4114_v19 = vor.u32 %v4568_v12, %v4113_v10  ;;  %2898 = vmatpush.bf16.msra.mxu2 %v4234_v11  ;;  %v4145_v11 = vld [vmem:[#allocation13 + $0x38] sm:$0xf] }
 0x384   :  { %v2118_v56 = vpop.f32.mrf.mxu2 }
 0x385   :  { %2914 = vmatpush.bf16.msra.mxu3 %v4166_v32  ;;  %v5095_v56 = vor.u32 %v4603_v52, %v4259_v55  ;;  %v4205_v32 = vld [vmem:[#allocation13 + $0xb0] sm:$0xf]  ;;  %2899 = vmatpush.bf16.msra.mxu2 %v4222_v59  ;;  %v4611_v52 = vld [vmem:[#allocation13 + $0x160] sm:$0xf0]  ;;  %v4169_v55 = vld [vmem:[#allocation13 + $0x68] sm:$0xf] }
 0x386   :  { %v4206_v23 = vor.u32 %v4590_v27, %v4205_v32  ;;  %v4170_v62 = vor.u32 %v4581_v54, %v4169_v55  ;;  %v4572_v32 = vld [vmem:[#allocation13 + $0x28] sm:$0xf0]  ;;  %v4241_v27 = vld [vmem:[#allocation13 + $0xf8] sm:$0xf] }
 0x387   :  { %2932 = vmatpush.bf16.msrb.mxu0 %v5095_v56 }
 0x389   :  { %2915 = vmatpush.bf16.msra.mxu3 %v4154_v41  ;;  %v4193_v41 = vld [vmem:[#allocation13 + $0x98] sm:$0xf] }
 0x38b   :  { %2478 = vmatmul.bf16.gmra.mxu1 %v2183_v60  ;;  %2514 = vmatmul.bf16.gmra.mxu3 %v2182_v37  ;;  %v4577_v37 = vld [vmem:[#allocation13 + $0x50] sm:$0xf0] }
 0x38c   :  { %2532 = vmatmul.bf16.gmra.mxu0 %v2183_v60  ;;  %v4150_v40 = vor.u32 %v4577_v37, %v4149_v35  ;;  %v4592_v37 = vld [vmem:[#allocation13 + $0xc8] sm:$0xf0] }
 0x38d   :  { %2916 = vmatpush.bf16.msra.mxu3 %v4142_v51  ;;  %2933 = vmatpush.bf16.msrb.mxu0 %v5102_v8  ;;  %v4210_v38 = vor.u32 %v4592_v37, %v4209_v36  ;;  %v4289_v51 = vld [vmem:[#allocation13 + $0x158] sm:$0xf]  ;;  %v4569_v36 = vld [vmem:[#allocation13 + $0x10] sm:$0xf0] }
 0x38e   :  { %2879 = vmatpush.bf16.msra.mxu1 %v4150_v40  ;;  %v4211_v40 = vld [vmem:[#allocation13 + $0xcc] sm:$0xf0]  ;;  %v4290_v17 = vor.u32 %v4611_v52, %v4289_v51  ;;  %v4593_v51 = vld [vmem:[#allocation13 + $0xd0] sm:$0xf0] }
 0x38f   :  { %v5119_v42 = vor.u32 %v4591_v18, %v4211_v40  ;;  %2900 = vmatpush.bf16.msra.mxu2 %v4210_v38 }
 0x391   :  { %2917 = vmatpush.bf16.msra.mxu3 %v4130_v5  ;;  %2934 = vmatpush.bf16.msrb.mxu0 %v5107_v34  ;;  %v4278_v5 = vor.u32 %v4608_v1, %v4277_v30 }
 0x392   :  { %2880 = vmatpush.bf16.msra.mxu1 %v4138_v50  ;;  %v2177_v50 = vld [vmem:[%s5171_s12] sm:$0x3] }
 0x393   :  { %2965 = vmatpush.bf16.msrb.mxu2 %v4302_v46  ;;  %v2185_v63 = vperm.slane %v2177_v50, 0  ;;  %v2186_v20 = vperm.slane %v2177_v50, 1  ;;  %v4217_v50 = vld [vmem:[#allocation13 + $0xc8] sm:$0xf] }
 0x395   :  { %2918 = vmatpush.bf16.msra.mxu3 %v4118_v15  ;;  %2935 = vmatpush.bf16.msrb.mxu0 %v5115_v7 }
 0x396   :  { %2881 = vmatpush.bf16.msra.mxu1 %v4126_v3  ;;  %v4157_v3 = vld [vmem:[#allocation13 + $0x50] sm:$0xf] }
 0x397   :  { %2966 = vmatpush.bf16.msrb.mxu2 %v4290_v17  ;;  %v4158_v10 = vor.u32 %v4578_v6, %v4157_v3 }
 0x399   :  { %4615 = vmatpush.bf16.msrb.mxu3 %v5082_v24  ;;  %v4587_v24 = vld [vmem:[#allocation13 + $0xa0] sm:$0xf0]  ;;  %2936 = vmatpush.bf16.msrb.mxu0 %v5119_v42 }
 0x39a   :  { %2882 = vmatpush.bf16.msra.mxu1 %v4114_v19  ;;  %v4194_v43 = vor.u32 %v4587_v24, %v4193_v41 }
 0x39b   :  { %2967 = vmatpush.bf16.msrb.mxu2 %v4278_v5 }
 0x39d   :  { %4616 = vmatpush.bf16.msrb.mxu3 %v5087_v58  ;;  %v4584_v58 = vld [vmem:[#allocation13 + $0x88] sm:$0xf0] }
 0x39e   :  { %2947 = vmatpush.bf16.msrb.mxu1 %v4206_v23  ;;  %v4182_v49 = vor.u32 %v4584_v58, %v4181_v39  ;;  %v4596_v39 = vld [vmem:[#allocation13 + $0xe8] sm:$0xf0] }
 0x39f   :  { %2968 = vmatpush.bf16.msrb.mxu2 %v4266_v14 }
 0x3a1   :  { %4617 = vmatpush.bf16.msrb.mxu3 %v5090_v45 }
 0x3a2   :  { %2948 = vmatpush.bf16.msrb.mxu1 %v4194_v43 }
 0x3a3   :  { %2969 = vmatpush.bf16.msrb.mxu2 %v4254_v31 }
 0x3a5   :  { %4618 = vmatpush.bf16.msrb.mxu3 %v5095_v56  ;;  %v4575_v56 = vld [vmem:[#allocation13 + $0x40] sm:$0xf0] }
 0x3a6   :  { %2949 = vmatpush.bf16.msrb.mxu1 %v4182_v49  ;;  %v4146_v19 = vor.u32 %v4575_v56, %v4145_v11 }
 0x3a9   :  { %4619 = vmatpush.bf16.msrb.mxu3 %v5102_v8 }
 0x3aa   :  { %2950 = vmatpush.bf16.msrb.mxu1 %v4170_v62 }
 0x3ad   :  { %4620 = vmatpush.bf16.msrb.mxu3 %v5107_v34  ;;  %v4134_v34 = vor.u32 %v4572_v32, %v4133_v29 }
 0x3ae   :  { %2951 = vmatpush.bf16.msrb.mxu1 %v4158_v10 }
 0x3b1   :  { %4621 = vmatpush.bf16.msrb.mxu3 %v5115_v7 }
 0x3b2   :  { %2952 = vmatpush.bf16.msrb.mxu1 %v4146_v19 }
 0x3b5   :  { %4622 = vmatpush.bf16.msrb.mxu3 %v5119_v42 }
 0x3b6   :  { %2953 = vmatpush.bf16.msrb.mxu1 %v4134_v34 }
 0x3d2   :  { %v5084_v26 = vpop.f32.mrf.mxu0 }
 0x3da   :  { %v5092_v44 = vpop.f32.mrf.mxu0 }
 0x3de   :  { %v5097_v57 = vpop.f32.mrf.mxu3  ;;  %v5099_v60 = vpop.f32.mrf.mxu2 }
 0x3df   :  { %v2439_v12 = vadd.f32 %v5097_v57, %v2185_v63 }
 0x3e1   :  { %v2457_v8 = vadd.f32 %v5084_v26, %v2439_v12  ;;  %v2493_v26 = vadd.f32 %v5099_v60, %v2186_v20  ;;  %v4229_v60 = vld [vmem:[#allocation13 + $0xe0] sm:$0xf] }
 0x3e2   :  { %v5104_v61 = vpop.f32.mrf.mxu0  ;;  %v4230_v49 = vor.u32 %v4596_v39, %v4229_v60 }
 0x3e6   :  { %v5109_v25 = vpop.f32.mrf.mxu3  ;;  %v5111_v16 = vpop.f32.mrf.mxu2 }
 0x3e7   :  { %v2441_v15 = vadd.f32 %v5109_v25, %v2185_v63  ;;  %v4599_v25 = vld [vmem:[#allocation13 + $0x100] sm:$0xf0]  ;;  %v2495_v7 = vadd.f32 %v5111_v16, %v2186_v20  ;;  %v4218_v16 = vor.u32 %v4593_v51, %v4217_v50 }
 0x3e8   :  { %v4242_v38 = vor.u32 %v4599_v25, %v4241_v27 }
 0x3e9   :  { %v2459_v57 = vadd.f32 %v5092_v44, %v2441_v15 }
 0x3ea   :  { %v2463_v35 = vpop.f32.mrf.mxu0  ;;  %2970 = vmatpush.bf16.msrb.mxu2 %v4242_v38 }
 0x3eb   :  { %v4121_v35 = vld [vmem:[#allocation13 + $0x8] sm:$0xf] }
 0x3ec   :  { %v4122_v40 = vor.u32 %v4569_v36, %v4121_v35  ;;  %v2992_v35 = vld [vmem:[%s5174_s15] sm:$0x7] }
 0x3ed   :  { %v2997_v39 = vperm.slane %v2992_v35, 2 }
 0x3ee   :  { %v5121_v47 = vpop.f32.mrf.mxu3  ;;  %v5123_v53 = vpop.f32.mrf.mxu2  ;;  %2954 = vmatpush.bf16.msrb.mxu1 %v4122_v40  ;;  %2971 = vmatpush.bf16.msrb.mxu2 %v4230_v49 }
 0x3ef   :  { %v2444_v4 = vadd.f32 %v5121_v47, %v2185_v63 }
 0x3f1   :  { %v2462_v47 = vadd.f32 %v5104_v61, %v2444_v4 }
 0x3f2   :  { %2972 = vmatpush.bf16.msrb.mxu2 %v4218_v16 }
 0x3f6   :  { %v2445_v0 = vpop.f32.mrf.mxu3  ;;  %v2499_v45 = vpop.f32.mrf.mxu2 }
 0x3f7   :  { %v2498_v45 = vadd.f32 %v5123_v53, %v2186_v20  ;;  %v2607_v20 = vld [vmem:[%s5173_s14] sm:$0x7] }
 0x3f8   :  { %v2474_v9 = vpop.f32.mrf.mxu1  ;;  %v2613_v28 = vperm.slane %v2607_v20, 0  ;;  %v2614_v29 = vperm.slane %v2607_v20, 1  ;;  %v2615_v36 = vperm.slane %v2607_v20, 2 }
 0x3f9   :  { %v2528_v13 = vpop.f32.mrf.mxu0  ;;  %v2475_v59 = vadd.f32 %v2474_v9, %v2457_v8 }
 0x3fb   :  { %v2537_v41 = vmax.f32 %v2475_v59, 0.0 }
 0x3fe   :  { %v2510_v22 = vpop.f32.mrf.mxu3 }
 0x3ff   :  { %v2511_v44 = vadd.f32 %v2510_v22, %v2493_v26 }
 0x400   :  { %v2476_v23 = vpop.f32.mrf.mxu1 }
 0x401   :  { %v2477_v37 = vadd.f32 %v2476_v23, %v2459_v57  ;;  %v2530_v18 = vpop.f32.mrf.mxu0  ;;  %v2529_v46 = vadd.f32 %v2528_v13, %v2511_v44 }
 0x403   :  { %v2539_v24 = vmax.f32 %v2477_v37, 0.0  ;;  %v2538_v17 = vmax.f32 %v2529_v46, 0.0  ;;  %v2995_v37 = vperm.slane %v2992_v35, 0 }
 0x405   :  { %v2608_v43 = vpack.c.bf16 %v2539_v24, %v2537_v41 }
 0x406   :  { %v2512_v48 = vpop.f32.mrf.mxu3 }
 0x407   :  { %v2513_v58 = vadd.f32 %v2512_v48, %v2495_v7  ;;  %2883 = vmatmul.bf16.vlgmr.msra.gmra.mxu1 %v2608_v43  ;;  %2919 = vmatmul.bf16.vlgmr.msra.gmra.mxu3 %v2608_v43 }
 0x408   :  { %v2479_v52 = vpop.f32.mrf.mxu1 }
 0x409   :  { %v2531_v55 = vadd.f32 %v2530_v18, %v2513_v58  ;;  %v2533_v42 = vpop.f32.mrf.mxu0  ;;  %v2480_v63 = vadd.f32 %v2479_v52, %v2462_v47  ;;  %v2996_v18 = vperm.slane %v2992_v35, 1 }
 0x40b   :  { %v2540_v54 = vmax.f32 %v2531_v55, 0.0  ;;  %v2541_v1 = vmax.f32 %v2480_v63, 0.0 }
 0x40d   :  { %v2609_v62 = vpack.c.bf16 %v2540_v54, %v2538_v17  ;;  %v2610_v6 = vpack.c.bf16 %v2541_v1, %v2541_v1 }
 0x40e   :  { %v2515_v0 = vpop.f32.mrf.mxu3 }
 0x40f   :  { %2901 = vmatmul.bf16.vlgmr.msra.gmra.mxu2 %v2609_v62  ;;  %2937 = vmatmul.bf16.vlgmr.msrb.gmra.mxu0 %v2609_v62  ;;  %v2516_v3 = vadd.f32 %v2515_v0, %v2498_v45 }
 0x410   :  { %v2481_v30 = vpop.f32.mrf.mxu1 }
 0x411   :  { %v2535_v5 = vpop.f32.mrf.mxu0  ;;  %v2534_v21 = vadd.f32 %v2533_v42, %v2516_v3 }
 0x413   :  { %v2542_v9 = vmax.f32 %v2534_v21, 0.0 }
 0x415   :  { %v2611_v10 = vpack.c.bf16 %v2542_v9, %v2542_v9 }
 0x416   :  { %v2517_v33 = vpop.f32.mrf.mxu3 }
 0x417   :  { %2888 = vmatmul.bf16.gmra.mxu1 %v2610_v6  ;;  %2924 = vmatmul.bf16.gmra.mxu3 %v2610_v6 }
 0x41f   :  { %2906 = vmatmul.bf16.gmra.mxu2 %v2611_v10 }
 0x427   :  { %2942 = vmatmul.bf16.vlgmr.msrb.gmra.mxu3 %v2611_v10  ;;  %2955 = vmatmul.bf16.vlgmr.msrb.gmra.mxu1 %v2608_v43 }
 0x42f   :  { %2973 = vmatmul.bf16.vlgmr.msrb.gmra.mxu2 %v2609_v62 }
 0x437   :  { %2960 = vmatmul.bf16.gmra.mxu1 %v2610_v6 }
 0x43f   :  { %2978 = vmatmul.bf16.gmra.mxu2 %v2611_v10 }
 0x484   :  { %v2884_v61 = vpop.f32.mrf.mxu1 }
 0x485   :  { %v2885_v57 = vadd.f32 %v2884_v61, %v2613_v28 }
 0x48a   :  { %v2920_v53 = vpop.f32.mrf.mxu3 }
 0x48b   :  { %v2921_v31 = vadd.f32 %v2920_v53, %v2614_v29 }
 0x48c   :  { %v2886_v11 = vpop.f32.mrf.mxu1  ;;  %v2938_v59 = vpop.f32.mrf.mxu0 }
 0x48d   :  { %v2939_v34 = vadd.f32 %v2938_v59, %v2921_v31  ;;  %v2887_v38 = vadd.f32 %v2886_v11, %v2613_v28 }
 0x48f   :  { %v2984_v40 = vmax.f32 %v2939_v34, 0.0 }
 0x491   :  { %v3002_v58 = vmul.f32 %v2996_v18, %v2984_v40 }
 0x492   :  { %v2902_v56 = vpop.f32.mrf.mxu2  ;;  %v2922_v12 = vpop.f32.mrf.mxu3 }
 0x493   :  { %v2903_v25 = vadd.f32 %v2902_v56, %v2885_v57  ;;  %v2923_v41 = vadd.f32 %v2922_v12, %v2614_v29 }
 0x494   :  { %v2889_v13 = vpop.f32.mrf.mxu1  ;;  %v2940_v44 = vpop.f32.mrf.mxu0 }
 0x495   :  { %v2983_v26 = vmax.f32 %v2903_v25, 0.0  ;;  %v2941_v49 = vadd.f32 %v2940_v44, %v2923_v41  ;;  %v2890_v62 = vadd.f32 %v2889_v13, %v2613_v28 }
 0x497   :  { %v3001_v4 = vmul.f32 %v2995_v37, %v2983_v26  ;;  %v2987_v42 = vmax.f32 %v2941_v49, 0.0 }
 0x499   :  { %v3010_v55 = vadd.f32 %v3002_v58, %v3001_v4  ;;  %v3005_v1 = vmul.f32 %v2996_v18, %v2987_v42 }
 0x49a   :  { %v2904_v14 = vpop.f32.mrf.mxu2  ;;  %v2925_v19 = vpop.f32.mrf.mxu3 }
 0x49b   :  { %v2905_v48 = vadd.f32 %v2904_v14, %v2887_v38  ;;  %v2926_v16 = vadd.f32 %v2925_v19, %v2614_v29 }
 0x49c   :  { %v2891_v15 = vpop.f32.mrf.mxu1 }
 0x49d   :  { %v2986_v51 = vmax.f32 %v2905_v48, 0.0 }
 0x49f   :  { %v3004_v63 = vmul.f32 %v2995_v37, %v2986_v51 }
 0x4a1   :  { %v3014_v33 = vadd.f32 %v3005_v1, %v3004_v63 }
 0x4a2   :  { %v2907_v8 = vpop.f32.mrf.mxu2  ;;  %v2927_v22 = vpop.f32.mrf.mxu3 }
 0x4a3   :  { %v2908_v3 = vadd.f32 %v2907_v8, %v2890_v62  ;;  %v4634_v22 = vld [vmem:[#allocation2] ss:$0 sm:$0xff] }
 0x4a4   :  { %v2956_v2 = vpop.f32.mrf.mxu1 }
 0x4a5   :  { %v2957_v24 = vadd.f32 %v2956_v2, %v2615_v36  ;;  %v2989_v9 = vmax.f32 %v2908_v3, 0.0 }
 0x4a7   :  { %v3007_v12 = vmul.f32 %v2995_v37, %v2989_v9 }
 0x4aa   :  { %v2909_v32 = vpop.f32.mrf.mxu2  ;;  %v2943_v27 = vpop.f32.mrf.mxu3 }
 0x4ab   :  { %v2944_v0 = vadd.f32 %v2943_v27, %v2926_v16 }
 0x4ac   :  { %v2958_v23 = vpop.f32.mrf.mxu1 }
 0x4ad   :  { %v2959_v17 = vadd.f32 %v2958_v23, %v2615_v36  ;;  %v2990_v6 = vmax.f32 %v2944_v0, 0.0 }
 0x4af   :  { %v3008_v11 = vmul.f32 %v2996_v18, %v2990_v6 }
 0x4b1   :  { %v3018_v19 = vadd.f32 %v3008_v11, %v3007_v12 }
 0x4b2   :  { %v2945_v7 = vpop.f32.mrf.mxu3  ;;  %v2974_v43 = vpop.f32.mrf.mxu2 }
 0x4b3   :  { %v2975_v60 = vadd.f32 %v2974_v43, %v2957_v24 }
 0x4b4   :  { %v2961_v46 = vpop.f32.mrf.mxu1 }
 0x4b5   :  { %v2985_v50 = vmax.f32 %v2975_v60, 0.0  ;;  %v2962_v10 = vadd.f32 %v2961_v46, %v2615_v36 }
 0x4b7   :  { %v3003_v52 = vmul.f32 %v2997_v39, %v2985_v50 }
 0x4b9   :  { %v3011_v54 = vadd.f32 %v3010_v55, %v3003_v52 }
 0x4ba   :  { %v2976_v47 = vpop.f32.mrf.mxu2 }
 0x4bb   :  { %v2977_v45 = vadd.f32 %v2976_v47, %v2959_v17  ;;  %3012 = vadd.xlane.f32.xlu0 %v3011_v54 }
 0x4bc   :  { %v2963_v30 = vpop.f32.mrf.mxu1 }
 0x4bd   :  { %v2988_v5 = vmax.f32 %v2977_v45, 0.0 }
 0x4bf   :  { %v3006_v21 = vmul.f32 %v2997_v39, %v2988_v5 }
 0x4c1   :  { %v3015_v61 = vadd.f32 %v3014_v33, %v3006_v21 }
 0x4c2   :  { %v2979_v53 = vpop.f32.mrf.mxu2 }
 0x4c3   :  { %v2980_v56 = vadd.f32 %v2979_v53, %v2962_v10  ;;  %3016 = vadd.xlane.f32.xlu0 %v3015_v61 }
 0x4c5   :  { %v2991_v13 = vmax.f32 %v2980_v56, 0.0 }
 0x4c7   :  { %v3009_v14 = vmul.f32 %v2997_v39, %v2991_v13 }
 0x4c9   :  { %v3019_v15 = vadd.f32 %v3018_v19, %v3009_v14 }
 0x4ca   :  { %v2981_v20 = vpop.f32.mrf.mxu2 }
 0x4cb   :  { %3020 = vadd.xlane.f32.xlu1 %v3019_v15 }
 0x52e   :  { %v3013_v8 = vpop.xlane.xlu0 %3012 }
 0x52f   :  { %v3025_v2 = vadd.f32 %v4634_v22, %v3013_v8 }
 0x531   :  { %v3028_v28 = vsub.f32 0.0, %v3025_v2 }
 0x533   :  { %v3031_v29 = vmul.f32 1.442695, %v3028_v28 }
 0x535   :  { %4635 = vpow2.f32 %v3031_v29 }
 0x536   :  { %v3017_v59 = vpop.xlane.xlu0 %3016 }
 0x537   :  { %v3026_v57 = vadd.f32 %v4634_v22, %v3017_v59 }
 0x539   :  { %v3029_v31 = vsub.f32 0.0, %v3026_v57 }
 0x53b   :  { %v4636_v32 = vpop.eup %4635  ;;  %v3033_v27 = vmul.f32 1.442695, %v3029_v31 }
 0x53c   :  { %v3037_v25 = vadd.f32 1.0, %v4636_v32 }
 0x53d   :  { %4637 = vpow2.f32 %v3033_v27 }
 0x53e   :  { %4639 = vrcp.f32 %v3037_v25  ;;  %v3021_v23 = vpop.xlane.xlu1 %3020 }
 0x53f   :  { %v3027_v34 = vadd.f32 %v4634_v22, %v3021_v23 }
 0x541   :  { %v3030_v35 = vsub.f32 0.0, %v3027_v34 }
 0x543   :  { %v4638_v36 = vpop.eup %4637  ;;  %v3035_v26 = vmul.f32 1.442695, %v3030_v35 }
 0x544   :  { %v4640_v37 = vpop.eup %4639  ;;  %v3038_v18 = vadd.f32 1.0, %v4638_v36 }
 0x545   :  { %3044 = vst.msk [vmem:[%s5176_s17] sm:$0xff] %vm3043_vm0, %v4640_v37  ;;  %4641 = vpow2.f32 %v3035_v26 }
 0x546   :  { %4643 = vrcp.f32 %v3038_v18 }
 0x54b   :  { %v4642_v38 = vpop.eup %4641 }
 0x54c   :  { %v4644_v40 = vpop.eup %4643  ;;  %v3039_v41 = vadd.f32 1.0, %v4642_v38 }
 0x54d   :  { %3045 = vst.msk [vmem:[%s5176_s17 + $0x8] sm:$0xff] %vm3043_vm0, %v4644_v40 }
 0x54e   :  { %4645 = vrcp.f32 %v3039_v41 }
 0x554   :  { %v4646_v44 = vpop.eup %4645 }
 0x555   :  { %3046 = vst.msk [vmem:[%s5176_s17 + $0x10] sm:$0xff] %vm3043_vm0, %v4646_v44 }
 0x556   :  { %3051 = vsyncpa [#allocation4], 1 }
 0x557   :  { %3052 = vsyncpa [#allocation6], 1 }
 0x558   :  { %3053 = vsyncpa [#allocation9], 1 }
 0x559   :  { %3054 = vsyncpa [#allocation12], 1 }

</bundles_post_ra>
